<compile_context>
chip_gen: v6e
topology: v6e:2x2x1
jax: 0.10.0
libtpu: 0.0.40
codegen_flags: <defaults>
</compile_context>

<pallas_src>
import jax
import jax.numpy as jnp
from jax import lax
from jax.experimental import pallas as pl
from jax.experimental.pallas import tpu as pltpu

KH, KW = 3, 3        # Conv2d kwargs chosen: kernel_size=3, stride=1, padding=1
NEG_SLOPE = 0.01     # nn.LeakyReLU default negative_slope
BN_EPS = 1e-5        # nn.BatchNorm2d default eps


def cnn_block_kernel(x_ref, w_ref, gamma_ref, beta_ref, out_ref,
                     conv_sc, scale_sc, shift_sc):
    """Fused Conv3x3 + BatchNorm(batch stats) + LeakyReLU.

    Grid = (phase, batch); both axes are "arbitrary" (sequential) because the
    batch statistics are global, so the conv results and the folded BN scale /
    shift live in scratch across grid steps.

      x_ref:     (1, H+2, W+2, Cin)  zero-padded NHWC image for this batch step
      w_ref:     (KH, KW, Cin, Cout) conv weights
      gamma_ref: (Cout, 1)           BN gamma (channels on sublanes)
      beta_ref:  (Cout, 1)           BN beta
      out_ref:   (1, Cout, H*W)      NCHW output block (lane-dense: H*W lanes)
      conv_sc:   (B, Cout, H*W)      VMEM-resident pre-BN conv intermediate
      scale_sc:  (Cout, 1)           folded BN scale = gamma * rsqrt(var + eps)
      shift_sc:  (Cout, 1)           folded BN shift = beta - mean * scale
    """
    phase = pl.program_id(0)
    b = pl.program_id(1)

    _, Hp2, Wp, Cin = x_ref.shape
    B, Cout, HW = conv_sc.shape
    H, W = Hp2 - 2, Wp - 2

    # ------------------- phase 0: conv -> VMEM scratch ------------------------
    @pl.when(phase == 0)
    def _():
        band = x_ref[0]                                   # (H+2, W+2, Cin)
        # 3x3 conv as 9 shifted MXU matmuls, f32 accumulation.
        acc = jnp.zeros((HW, Cout), jnp.float32)
        for kh in range(KH):
            for kw in range(KW):
                tap = band[kh:kh + H, kw:kw + W, :].reshape(HW, Cin)
                acc = acc + jnp.dot(tap, w_ref[kh, kw],
                                    preferred_element_type=jnp.float32)
        # NOTE: conv bias intentionally omitted -- a per-channel constant
        # cancels exactly under train-mode BatchNorm.
        #
        # Transpose ONCE so the scratch, the BN/act math and the HBM output are
        # lane-dense (H*W on the 128-lane axis) and already NCHW-ordered.
        conv_sc[b] = acc.T                                # (Cout, H*W)

    # ------- phase 1 (first step): batch stats -> folded BN scale/shift -------
    @pl.when(jnp.logical_and(phase == 1, b == 0))
    def _():
        n = float(B * HW)
        total = jnp.zeros((Cout, 1), jnp.float32)
        for i in range(B):                                # B is static, data in VMEM
            total = total + jnp.sum(conv_sc[i], axis=1, keepdims=True)
        mean = total / n
        # Numerically stable two-pass (centered) variance over the scratch.
        m2 = jnp.zeros((Cout, 1), jnp.float32)
        for i in range(B):
            d = conv_sc[i] - mean
            m2 = m2 + jnp.sum(d * d, axis=1, keepdims=True)
        var = m2 / n                                      # biased var (train-mode BN)
        scale = gamma_ref[...] * lax.rsqrt(var + BN_EPS)
        scale_sc[...] = scale
        shift_sc[...] = beta_ref[...] - mean * scale

    # ---------------- phase 1: folded BN FMA + LeakyReLU ----------------------
    @pl.when(phase == 1)
    def _():
        y = conv_sc[b] * scale_sc[...] + shift_sc[...]    # (Cout, H*W), lane-dense
        out_ref[0] = jnp.where(y > 0, y, NEG_SLOPE * y)


def _round_up(x, m):
    return -(-x // m) * m


def _vmem_bytes_per_core():
    """Physical VMEM per TensorCore (64 MiB on v7x, 128 MiB on v5e/v6e)."""
    try:
        return int(pltpu.get_tpu_info().vmem_capacity_bytes)
    except Exception:
        return 64 * 1024 * 1024          # conservative fallback (v7x per-core)


def cnn_block(x_nchw, weight_oihw, bias, gamma, beta):
    """CNNBlock forward: (B, Cin, H, W) f32 -> (B, Cout, H, W) f32.

    `bias` is accepted for API parity with nn.Conv2d but is not applied: under
    train-mode BatchNorm a per-channel constant cancels exactly.
    """
    del bias
    B, Cin, H, W = x_nchw.shape
    Cout = weight_oihw.shape[0]
    Hp2, Wp, HW = H + 2, W + 2, H * W

    # ---- per-generation VMEM budget + fused-path fit check -------------------
    budget = (_vmem_bytes_per_core() * 3) // 4          # headroom for Mosaic scratch
    slab = _round_up(Cout, 8) * _round_up(HW, 128) * 4                # (Cout, H*W) f32
    band = Hp2 * _round_up(Wp, 8) * _round_up(Cin, 128) * 4           # one padded image
    need = B * slab + 2 * band + 2 * slab + (4 << 20)   # scratch + dbl-buffered I/O + fudge
    if need > budget:
        # TODO(synk): two-pass fallback (lane-dense bf16 conv intermediate in HBM,
        # per-tile partial stats, fully parallel grids) for huge activations.
        raise NotImplementedError(
            f"activation too large for the fused VMEM-resident path "
            f"({need} B needed, {budget} B budget)")
    vmem_limit = int(min(budget, max(need, 16 << 20)))  # derived from the byte budget

    # ---- input glue: NCHW -> zero-padded NHWC (one small-tensor XLA pass) ----
    x_pad = jnp.pad(jnp.transpose(x_nchw, (0, 2, 3, 1)),
                    ((0, 0), (1, 1), (1, 1), (0, 0)))               # (B, H+2, W+2, Cin)
    w_hwio = jnp.transpose(weight_oihw, (2, 3, 1, 0))               # (KH, KW, Cin, Cout)
    gamma_c = gamma.astype(jnp.float32).reshape(Cout, 1)
    beta_c = beta.astype(jnp.float32).reshape(Cout, 1)

    out_flat = pl.pallas_call(
        cnn_block_kernel,
        out_shape=jax.ShapeDtypeStruct((B, Cout, HW), jnp.float32),
        grid=(2, B),                                                # (phase, batch)
        in_specs=[
            # Phase 1 never reads the image: pin the index to the last fetched
            # block so no input DMA is re-issued during phase 1.
            pl.BlockSpec((1, Hp2, Wp, Cin),
                         lambda p, b: ((1 - p) * b + p * (B - 1), 0, 0, 0)),
            pl.BlockSpec((KH, KW, Cin, Cout), lambda p, b: (0, 0, 0, 0)),
            pl.BlockSpec((Cout, 1), lambda p, b: (0, 0)),
            pl.BlockSpec((Cout, 1), lambda p, b: (0, 0)),
        ],
        # Output blocks are produced only in phase 1; during phase 0 stay on
        # block 0 so no garbage write-back DMAs are triggered.
        out_specs=pl.BlockSpec((1, Cout, HW), lambda p, b: (p * b, 0, 0)),
        scratch_shapes=[
            pltpu.VMEM((B, Cout, HW), jnp.float32),   # conv intermediate (never hits HBM)
            pltpu.VMEM((Cout, 1), jnp.float32),       # folded BN scale
            pltpu.VMEM((Cout, 1), jnp.float32),       # folded BN shift
        ],
        # Both axes must be sequential: batch statistics are global, so every
        # grid step shares the same scratch (a megacore-parallel variant needs
        # the two-pass fallback noted above).
        compiler_params=pltpu.CompilerParams(
            dimension_semantics=("arbitrary", "arbitrary"),
            vmem_limit_bytes=vmem_limit),
    )(x_pad, w_hwio, gamma_c, beta_c)

    # Row-major split of the trailing axis only: this reshape is free (no transpose).
    return out_flat.reshape(B, Cout, H, W)


def reference(x_nchw, weight_oihw, bias, gamma, beta):
    """Pure-JAX reference matching PyTorch semantics (train-mode BN, with bias)."""
    conv = lax.conv_general_dilated(
        x_nchw, weight_oihw, window_strides=(1, 1),
        padding=((1, 1), (1, 1)),
        dimension_numbers=("NCHW", "OIHW", "NCHW"))
    conv = conv + bias[None, :, None, None]
    mean = jnp.mean(conv, axis=(0, 2, 3), keepdims=True)
    var = jnp.mean((conv - mean) ** 2, axis=(0, 2, 3), keepdims=True)
    y = (conv - mean) / jnp.sqrt(var + BN_EPS)
    y = y * gamma[None, :, None, None] + beta[None, :, None, None]
    return jnp.where(y > 0, y, NEG_SLOPE * y)


if __name__ == "__main__":
    B, Cin, Cout, H, W = 2, 4, 8, 16, 16

    key = jax.random.PRNGKey(0)
    kx, kw, kb, kg, kbt = jax.random.split(key, 5)
    x = jax.random.normal(kx, (B, Cin, H, W), jnp.float32)
    weight = 0.1 * jax.random.normal(kw, (Cout, Cin, KH, KW), jnp.float32)
    bias = 0.1 * jax.random.normal(kb, (Cout,), jnp.float32)
    gamma = 1.0 + 0.1 * jax.random.normal(kg, (Cout,), jnp.float32)
    beta = 0.1 * jax.random.normal(kbt, (Cout,), jnp.float32)

    out = cnn_block(x, weight, bias, gamma, beta)
    jax.block_until_ready(out)

    ref = reference(x, weight, bias, gamma, beta)
    assert out.shape == (B, Cout, H, W)
    err = jnp.max(jnp.abs(out - ref))
    assert jnp.allclose(out, ref, rtol=1e-4, atol=1e-4), f"max err {err}"

    print("KERNEL_OK")
</pallas_src>

<mosaic_0001>
module attributes {stable_mosaic.version = 11 : i64} {
  func.func @cnn_block_kernel(%arg0: i32, %arg1: i32, %arg2: memref<1x18x18x4xf32, #tpu.memory_space<vmem>>, %arg3: memref<3x3x4x8xf32, #tpu.memory_space<vmem>>, %arg4: memref<8x1xf32, #tpu.memory_space<vmem>>, %arg5: memref<8x1xf32, #tpu.memory_space<vmem>>, %arg6: memref<1x8x256xf32, #tpu.memory_space<vmem>>, %arg7: memref<2x8x256xf32, #tpu.memory_space<vmem>>, %arg8: memref<8x1xf32, #tpu.memory_space<vmem>>, %arg9: memref<8x1xf32, #tpu.memory_space<vmem>>) attributes {dimension_semantics = [#tpu.dimension_semantics<arbitrary>, #tpu.dimension_semantics<arbitrary>], iteration_bounds = array<i64: 2, 2>, scalar_prefetch = 0 : i64, scratch_operands = 3 : i64, tpu.core_type = #tpu.core_type<tc>, window_params = [{transform_indices = @transform_0, window_bounds = array<i64: 1, 18, 18, 4>}, {pipeline_mode = #tpu.pipeline_mode<synchronous>, transform_indices = @transform_1, window_bounds = array<i64: 3, 3, 4, 8>}, {pipeline_mode = #tpu.pipeline_mode<synchronous>, transform_indices = @transform_2, window_bounds = array<i64: 8, 1>}, {pipeline_mode = #tpu.pipeline_mode<synchronous>, transform_indices = @transform_3, window_bounds = array<i64: 8, 1>}, {transform_indices = @transform_4, window_bounds = array<i64: 1, 8, 256>}]} {
    %c0_i32 = arith.constant 0 : i32
    %0 = arith.cmpi eq, %arg0, %c0_i32 : i32
    %1 = arith.extui %0 : i1 to i32
    %c0_i32_0 = arith.constant 0 : i32
    %2 = arith.cmpi ne, %1, %c0_i32_0 : i32
    scf.if %2 {
      %c0 = arith.constant 0 : index
      %c0_5 = arith.constant 0 : index
      %c0_6 = arith.constant 0 : index
      %c0_7 = arith.constant 0 : index
      %11 = vector.load %arg2[%c0, %c0_5, %c0_6, %c0_7] : memref<1x18x18x4xf32, #tpu.memory_space<vmem>>, vector<1x18x18x4xf32>
      %12 = vector.shape_cast %11 : vector<1x18x18x4xf32> to vector<18x18x4xf32>
      %cst = arith.constant 0.000000e+00 : f32
      %13 = vector.broadcast %cst : f32 to vector<256x8xf32>
      %14 = vector.extract_strided_slice %12 {offsets = [0, 0, 0], sizes = [16, 16, 4], strides = [1, 1, 1]} : vector<18x18x4xf32> to vector<16x16x4xf32>
      %15 = vector.shape_cast %14 : vector<16x16x4xf32> to vector<256x4xf32>
      %c0_8 = arith.constant 0 : index
      %c0_9 = arith.constant 0 : index
      %c0_10 = arith.constant 0 : index
      %c0_11 = arith.constant 0 : index
      %16 = vector.load %arg3[%c0_8, %c0_9, %c0_10, %c0_11] : memref<3x3x4x8xf32, #tpu.memory_space<vmem>>, vector<1x1x4x8xf32>
      %17 = vector.shape_cast %16 : vector<1x1x4x8xf32> to vector<4x8xf32>
      %cst_12 = arith.constant dense<0.000000e+00> : vector<256x8xf32>
      %18 = tpu.matmul %15, %17, %cst_12 {dimension_numbers = #tpu.dot_dimension_numbers<[1], [0], [0], [1], [0, 0, 1, 1], [], []>} : vector<256x4xf32>, vector<4x8xf32>, vector<256x8xf32> -> vector<256x8xf32>
      %19 = arith.addf %13, %18 : vector<256x8xf32>
      %20 = vector.extract_strided_slice %12 {offsets = [0, 1, 0], sizes = [16, 16, 4], strides = [1, 1, 1]} : vector<18x18x4xf32> to vector<16x16x4xf32>
      %21 = vector.shape_cast %20 : vector<16x16x4xf32> to vector<256x4xf32>
      %c0_13 = arith.constant 0 : index
      %c1 = arith.constant 1 : index
      %c0_14 = arith.constant 0 : index
      %c0_15 = arith.constant 0 : index
      %22 = vector.load %arg3[%c0_13, %c1, %c0_14, %c0_15] : memref<3x3x4x8xf32, #tpu.memory_space<vmem>>, vector<1x1x4x8xf32>
      %23 = vector.shape_cast %22 : vector<1x1x4x8xf32> to vector<4x8xf32>
      %cst_16 = arith.constant dense<0.000000e+00> : vector<256x8xf32>
      %24 = tpu.matmul %21, %23, %cst_16 {dimension_numbers = #tpu.dot_dimension_numbers<[1], [0], [0], [1], [0, 0, 1, 1], [], []>} : vector<256x4xf32>, vector<4x8xf32>, vector<256x8xf32> -> vector<256x8xf32>
      %25 = arith.addf %19, %24 : vector<256x8xf32>
      %26 = vector.extract_strided_slice %12 {offsets = [0, 2, 0], sizes = [16, 16, 4], strides = [1, 1, 1]} : vector<18x18x4xf32> to vector<16x16x4xf32>
      %27 = vector.shape_cast %26 : vector<16x16x4xf32> to vector<256x4xf32>
      %c0_17 = arith.constant 0 : index
      %c2 = arith.constant 2 : index
      %c0_18 = arith.constant 0 : index
      %c0_19 = arith.constant 0 : index
      %28 = vector.load %arg3[%c0_17, %c2, %c0_18, %c0_19] : memref<3x3x4x8xf32, #tpu.memory_space<vmem>>, vector<1x1x4x8xf32>
      %29 = vector.shape_cast %28 : vector<1x1x4x8xf32> to vector<4x8xf32>
      %cst_20 = arith.constant dense<0.000000e+00> : vector<256x8xf32>
      %30 = tpu.matmul %27, %29, %cst_20 {dimension_numbers = #tpu.dot_dimension_numbers<[1], [0], [0], [1], [0, 0, 1, 1], [], []>} : vector<256x4xf32>, vector<4x8xf32>, vector<256x8xf32> -> vector<256x8xf32>
      %31 = arith.addf %25, %30 : vector<256x8xf32>
      %32 = vector.extract_strided_slice %12 {offsets = [1, 0, 0], sizes = [16, 16, 4], strides = [1, 1, 1]} : vector<18x18x4xf32> to vector<16x16x4xf32>
      %33 = vector.shape_cast %32 : vector<16x16x4xf32> to vector<256x4xf32>
      %c1_21 = arith.constant 1 : index
      %c0_22 = arith.constant 0 : index
      %c0_23 = arith.constant 0 : index
      %c0_24 = arith.constant 0 : index
      %34 = vector.load %arg3[%c1_21, %c0_22, %c0_23, %c0_24] : memref<3x3x4x8xf32, #tpu.memory_space<vmem>>, vector<1x1x4x8xf32>
      %35 = vector.shape_cast %34 : vector<1x1x4x8xf32> to vector<4x8xf32>
      %cst_25 = arith.constant dense<0.000000e+00> : vector<256x8xf32>
      %36 = tpu.matmul %33, %35, %cst_25 {dimension_numbers = #tpu.dot_dimension_numbers<[1], [0], [0], [1], [0, 0, 1, 1], [], []>} : vector<256x4xf32>, vector<4x8xf32>, vector<256x8xf32> -> vector<256x8xf32>
      %37 = arith.addf %31, %36 : vector<256x8xf32>
      %38 = vector.extract_strided_slice %12 {offsets = [1, 1, 0], sizes = [16, 16, 4], strides = [1, 1, 1]} : vector<18x18x4xf32> to vector<16x16x4xf32>
      %39 = vector.shape_cast %38 : vector<16x16x4xf32> to vector<256x4xf32>
      %c1_26 = arith.constant 1 : index
      %c1_27 = arith.constant 1 : index
      %c0_28 = arith.constant 0 : index
      %c0_29 = arith.constant 0 : index
      %40 = vector.load %arg3[%c1_26, %c1_27, %c0_28, %c0_29] : memref<3x3x4x8xf32, #tpu.memory_space<vmem>>, vector<1x1x4x8xf32>
      %41 = vector.shape_cast %40 : vector<1x1x4x8xf32> to vector<4x8xf32>
      %cst_30 = arith.constant dense<0.000000e+00> : vector<256x8xf32>
      %42 = tpu.matmul %39, %41, %cst_30 {dimension_numbers = #tpu.dot_dimension_numbers<[1], [0], [0], [1], [0, 0, 1, 1], [], []>} : vector<256x4xf32>, vector<4x8xf32>, vector<256x8xf32> -> vector<256x8xf32>
      %43 = arith.addf %37, %42 : vector<256x8xf32>
      %44 = vector.extract_strided_slice %12 {offsets = [1, 2, 0], sizes = [16, 16, 4], strides = [1, 1, 1]} : vector<18x18x4xf32> to vector<16x16x4xf32>
      %45 = vector.shape_cast %44 : vector<16x16x4xf32> to vector<256x4xf32>
      %c1_31 = arith.constant 1 : index
      %c2_32 = arith.constant 2 : index
      %c0_33 = arith.constant 0 : index
      %c0_34 = arith.constant 0 : index
      %46 = vector.load %arg3[%c1_31, %c2_32, %c0_33, %c0_34] : memref<3x3x4x8xf32, #tpu.memory_space<vmem>>, vector<1x1x4x8xf32>
      %47 = vector.shape_cast %46 : vector<1x1x4x8xf32> to vector<4x8xf32>
      %cst_35 = arith.constant dense<0.000000e+00> : vector<256x8xf32>
      %48 = tpu.matmul %45, %47, %cst_35 {dimension_numbers = #tpu.dot_dimension_numbers<[1], [0], [0], [1], [0, 0, 1, 1], [], []>} : vector<256x4xf32>, vector<4x8xf32>, vector<256x8xf32> -> vector<256x8xf32>
      %49 = arith.addf %43, %48 : vector<256x8xf32>
      %50 = vector.extract_strided_slice %12 {offsets = [2, 0, 0], sizes = [16, 16, 4], strides = [1, 1, 1]} : vector<18x18x4xf32> to vector<16x16x4xf32>
      %51 = vector.shape_cast %50 : vector<16x16x4xf32> to vector<256x4xf32>
      %c2_36 = arith.constant 2 : index
      %c0_37 = arith.constant 0 : index
      %c0_38 = arith.constant 0 : index
      %c0_39 = arith.constant 0 : index
      %52 = vector.load %arg3[%c2_36, %c0_37, %c0_38, %c0_39] : memref<3x3x4x8xf32, #tpu.memory_space<vmem>>, vector<1x1x4x8xf32>
      %53 = vector.shape_cast %52 : vector<1x1x4x8xf32> to vector<4x8xf32>
      %cst_40 = arith.constant dense<0.000000e+00> : vector<256x8xf32>
      %54 = tpu.matmul %51, %53, %cst_40 {dimension_numbers = #tpu.dot_dimension_numbers<[1], [0], [0], [1], [0, 0, 1, 1], [], []>} : vector<256x4xf32>, vector<4x8xf32>, vector<256x8xf32> -> vector<256x8xf32>
      %55 = arith.addf %49, %54 : vector<256x8xf32>
      %56 = vector.extract_strided_slice %12 {offsets = [2, 1, 0], sizes = [16, 16, 4], strides = [1, 1, 1]} : vector<18x18x4xf32> to vector<16x16x4xf32>
      %57 = vector.shape_cast %56 : vector<16x16x4xf32> to vector<256x4xf32>
      %c2_41 = arith.constant 2 : index
      %c1_42 = arith.constant 1 : index
      %c0_43 = arith.constant 0 : index
      %c0_44 = arith.constant 0 : index
      %58 = vector.load %arg3[%c2_41, %c1_42, %c0_43, %c0_44] : memref<3x3x4x8xf32, #tpu.memory_space<vmem>>, vector<1x1x4x8xf32>
      %59 = vector.shape_cast %58 : vector<1x1x4x8xf32> to vector<4x8xf32>
      %cst_45 = arith.constant dense<0.000000e+00> : vector<256x8xf32>
      %60 = tpu.matmul %57, %59, %cst_45 {dimension_numbers = #tpu.dot_dimension_numbers<[1], [0], [0], [1], [0, 0, 1, 1], [], []>} : vector<256x4xf32>, vector<4x8xf32>, vector<256x8xf32> -> vector<256x8xf32>
      %61 = arith.addf %55, %60 : vector<256x8xf32>
      %62 = vector.extract_strided_slice %12 {offsets = [2, 2, 0], sizes = [16, 16, 4], strides = [1, 1, 1]} : vector<18x18x4xf32> to vector<16x16x4xf32>
      %63 = vector.shape_cast %62 : vector<16x16x4xf32> to vector<256x4xf32>
      %c2_46 = arith.constant 2 : index
      %c2_47 = arith.constant 2 : index
      %c0_48 = arith.constant 0 : index
      %c0_49 = arith.constant 0 : index
      %64 = vector.load %arg3[%c2_46, %c2_47, %c0_48, %c0_49] : memref<3x3x4x8xf32, #tpu.memory_space<vmem>>, vector<1x1x4x8xf32>
      %65 = vector.shape_cast %64 : vector<1x1x4x8xf32> to vector<4x8xf32>
      %cst_50 = arith.constant dense<0.000000e+00> : vector<256x8xf32>
      %66 = tpu.matmul %63, %65, %cst_50 {dimension_numbers = #tpu.dot_dimension_numbers<[1], [0], [0], [1], [0, 0, 1, 1], [], []>} : vector<256x4xf32>, vector<4x8xf32>, vector<256x8xf32> -> vector<256x8xf32>
      %67 = arith.addf %61, %66 : vector<256x8xf32>
      %68 = tpu.transpose %67, [1, 0] : vector<256x8xf32> -> vector<8x256xf32>
      %69 = arith.index_cast %arg1 : i32 to index
      %c0_51 = arith.constant 0 : index
      %c0_52 = arith.constant 0 : index
      %70 = vector.load %arg7[%69, %c0_51, %c0_52] : memref<2x8x256xf32, #tpu.memory_space<vmem>>, vector<1x8x256xf32>
      %71 = vector.shape_cast %70 : vector<1x8x256xf32> to vector<8x256xf32>
      %72 = vector.shape_cast %68 : vector<8x256xf32> to vector<1x8x256xf32>
      tpu.vector_store %arg7[%69, %c0_51, %c0_52], %72 {strides = array<i32>} : memref<2x8x256xf32, #tpu.memory_space<vmem>>, vector<1x8x256xf32>,
    } else {
    }
    %c1_i32 = arith.constant 1 : i32
    %3 = arith.cmpi eq, %arg0, %c1_i32 : i32
    %c0_i32_1 = arith.constant 0 : i32
    %4 = arith.cmpi eq, %arg1, %c0_i32_1 : i32
    %5 = arith.andi %3, %4 : i1
    %6 = arith.extui %5 : i1 to i32
    %c0_i32_2 = arith.constant 0 : i32
    %7 = arith.cmpi ne, %6, %c0_i32_2 : i32
    scf.if %7 {
      %cst = arith.constant 0.000000e+00 : f32
      %11 = vector.broadcast %cst : f32 to vector<8x1xf32>
      %c0 = arith.constant 0 : index
      %c0_5 = arith.constant 0 : index
      %c0_6 = arith.constant 0 : index
      %12 = vector.load %arg7[%c0, %c0_5, %c0_6] : memref<2x8x256xf32, #tpu.memory_space<vmem>>, vector<1x8x256xf32>
      %13 = vector.shape_cast %12 : vector<1x8x256xf32> to vector<8x256xf32>
      %cst_7 = arith.constant dense<0.000000e+00> : vector<8xf32>
      %14 = vector.multi_reduction <add>, %13, %cst_7 [1] : vector<8x256xf32> to vector<8xf32>
      %15 = vector.shape_cast %14 : vector<8xf32> to vector<8x1xf32>
      %16 = arith.addf %11, %15 : vector<8x1xf32>
      %c1 = arith.constant 1 : index
      %c0_8 = arith.constant 0 : index
      %c0_9 = arith.constant 0 : index
      %17 = vector.load %arg7[%c1, %c0_8, %c0_9] : memref<2x8x256xf32, #tpu.memory_space<vmem>>, vector<1x8x256xf32>
      %18 = vector.shape_cast %17 : vector<1x8x256xf32> to vector<8x256xf32>
      %cst_10 = arith.constant dense<0.000000e+00> : vector<8xf32>
      %19 = vector.multi_reduction <add>, %18, %cst_10 [1] : vector<8x256xf32> to vector<8xf32>
      %20 = vector.shape_cast %19 : vector<8xf32> to vector<8x1xf32>
      %21 = arith.addf %16, %20 : vector<8x1xf32>
      %cst_11 = arith.constant 5.120000e+02 : f32
      %22 = vector.broadcast %cst_11 : f32 to vector<8x1xf32>
      %23 = arith.divf %21, %22 : vector<8x1xf32>
      %cst_12 = arith.constant 0.000000e+00 : f32
      %24 = vector.broadcast %cst_12 : f32 to vector<8x1xf32>
      %c0_13 = arith.constant 0 : index
      %c0_14 = arith.constant 0 : index
      %c0_15 = arith.constant 0 : index
      %25 = vector.load %arg7[%c0_13, %c0_14, %c0_15] : memref<2x8x256xf32, #tpu.memory_space<vmem>>, vector<1x8x256xf32>
      %26 = vector.shape_cast %25 : vector<1x8x256xf32> to vector<8x256xf32>
      %27 = vector.broadcast %23 : vector<8x1xf32> to vector<8x256xf32>
      %28 = arith.subf %26, %27 : vector<8x256xf32>
      %29 = arith.mulf %28, %28 : vector<8x256xf32>
      %cst_16 = arith.constant dense<0.000000e+00> : vector<8xf32>
      %30 = vector.multi_reduction <add>, %29, %cst_16 [1] : vector<8x256xf32> to vector<8xf32>
      %31 = vector.shape_cast %30 : vector<8xf32> to vector<8x1xf32>
      %32 = arith.addf %24, %31 : vector<8x1xf32>
      %c1_17 = arith.constant 1 : index
      %c0_18 = arith.constant 0 : index
      %c0_19 = arith.constant 0 : index
      %33 = vector.load %arg7[%c1_17, %c0_18, %c0_19] : memref<2x8x256xf32, #tpu.memory_space<vmem>>, vector<1x8x256xf32>
      %34 = vector.shape_cast %33 : vector<1x8x256xf32> to vector<8x256xf32>
      %35 = vector.broadcast %23 : vector<8x1xf32> to vector<8x256xf32>
      %36 = arith.subf %34, %35 : vector<8x256xf32>
      %37 = arith.mulf %36, %36 : vector<8x256xf32>
      %cst_20 = arith.constant dense<0.000000e+00> : vector<8xf32>
      %38 = vector.multi_reduction <add>, %37, %cst_20 [1] : vector<8x256xf32> to vector<8xf32>
      %39 = vector.shape_cast %38 : vector<8xf32> to vector<8x1xf32>
      %40 = arith.addf %32, %39 : vector<8x1xf32>
      %cst_21 = arith.constant 5.120000e+02 : f32
      %41 = vector.broadcast %cst_21 : f32 to vector<8x1xf32>
      %42 = arith.divf %40, %41 : vector<8x1xf32>
      %c0_22 = arith.constant 0 : index
      %c0_23 = arith.constant 0 : index
      %43 = vector.load %arg4[%c0_22, %c0_23] : memref<8x1xf32, #tpu.memory_space<vmem>>, vector<8x1xf32>
      %cst_24 = arith.constant 9.99999974E-6 : f32
      %44 = vector.broadcast %cst_24 : f32 to vector<8x1xf32>
      %45 = arith.addf %42, %44 : vector<8x1xf32>
      %46 = math.rsqrt %45 : vector<8x1xf32>
      %47 = arith.mulf %43, %46 : vector<8x1xf32>
      %c0_25 = arith.constant 0 : index
      %c0_26 = arith.constant 0 : index
      %48 = vector.load %arg8[%c0_25, %c0_26] : memref<8x1xf32, #tpu.memory_space<vmem>>, vector<8x1xf32>
      tpu.vector_store %arg8[%c0_25, %c0_26], %47 {strides = array<i32>} : memref<8x1xf32, #tpu.memory_space<vmem>>, vector<8x1xf32>,
      %c0_27 = arith.constant 0 : index
      %c0_28 = arith.constant 0 : index
      %49 = vector.load %arg5[%c0_27, %c0_28] : memref<8x1xf32, #tpu.memory_space<vmem>>, vector<8x1xf32>
      %50 = arith.mulf %23, %47 : vector<8x1xf32>
      %51 = arith.subf %49, %50 : vector<8x1xf32>
      %c0_29 = arith.constant 0 : index
      %c0_30 = arith.constant 0 : index
      %52 = vector.load %arg9[%c0_29, %c0_30] : memref<8x1xf32, #tpu.memory_space<vmem>>, vector<8x1xf32>
      tpu.vector_store %arg9[%c0_29, %c0_30], %51 {strides = array<i32>} : memref<8x1xf32, #tpu.memory_space<vmem>>, vector<8x1xf32>,
    } else {
    }
    %c1_i32_3 = arith.constant 1 : i32
    %8 = arith.cmpi eq, %arg0, %c1_i32_3 : i32
    %9 = arith.extui %8 : i1 to i32
    %c0_i32_4 = arith.constant 0 : i32
    %10 = arith.cmpi ne, %9, %c0_i32_4 : i32
    scf.if %10 {
      %11 = arith.index_cast %arg1 : i32 to index
      %c0 = arith.constant 0 : index
      %c0_5 = arith.constant 0 : index
      %12 = vector.load %arg7[%11, %c0, %c0_5] : memref<2x8x256xf32, #tpu.memory_space<vmem>>, vector<1x8x256xf32>
      %13 = vector.shape_cast %12 : vector<1x8x256xf32> to vector<8x256xf32>
      %c0_6 = arith.constant 0 : index
      %c0_7 = arith.constant 0 : index
      %14 = vector.load %arg8[%c0_6, %c0_7] : memref<8x1xf32, #tpu.memory_space<vmem>>, vector<8x1xf32>
      %15 = vector.broadcast %14 : vector<8x1xf32> to vector<8x256xf32>
      %16 = arith.mulf %13, %15 : vector<8x256xf32>
      %c0_8 = arith.constant 0 : index
      %c0_9 = arith.constant 0 : index
      %17 = vector.load %arg9[%c0_8, %c0_9] : memref<8x1xf32, #tpu.memory_space<vmem>>, vector<8x1xf32>
      %18 = vector.broadcast %17 : vector<8x1xf32> to vector<8x256xf32>
      %19 = arith.addf %16, %18 : vector<8x256xf32>
      %cst = arith.constant 0.000000e+00 : f32
      %20 = vector.broadcast %cst : f32 to vector<8x256xf32>
      %21 = arith.cmpf ogt, %19, %20 : vector<8x256xf32>
      %cst_10 = arith.constant 0.00999999977 : f32
      %22 = vector.broadcast %cst_10 : f32 to vector<8x256xf32>
      %23 = arith.mulf %22, %19 : vector<8x256xf32>
      %24 = arith.select %21, %19, %23 : vector<8x256xi1>, vector<8x256xf32>
      %c0_11 = arith.constant 0 : index
      %c0_12 = arith.constant 0 : index
      %c0_13 = arith.constant 0 : index
      %25 = vector.load %arg6[%c0_11, %c0_12, %c0_13] : memref<1x8x256xf32, #tpu.memory_space<vmem>>, vector<1x8x256xf32>
      %26 = vector.shape_cast %25 : vector<1x8x256xf32> to vector<8x256xf32>
      %27 = vector.shape_cast %24 : vector<8x256xf32> to vector<1x8x256xf32>
      tpu.vector_store %arg6[%c0_11, %c0_12, %c0_13], %27 {strides = array<i32>} : memref<1x8x256xf32, #tpu.memory_space<vmem>>, vector<1x8x256xf32>,
    } else {
    }
    return
  }
  func.func @transform_0(%arg0: i32, %arg1: i32) -> (i32, i32, i32, i32) {
    %c1_i32 = arith.constant 1 : i32
    %0 = arith.subi %c1_i32, %arg0 : i32
    %1 = arith.muli %0, %arg1 : i32
    %c1_i32_0 = arith.constant 1 : i32
    %2 = arith.muli %arg0, %c1_i32_0 : i32
    %3 = arith.addi %1, %2 : i32
    %c0_i32 = arith.constant 0 : i32
    %c0_i32_1 = arith.constant 0 : i32
    %c0_i32_2 = arith.constant 0 : i32
    %c0_i32_3 = arith.constant 0 : i32
    return %3, %c0_i32, %c0_i32_1, %c0_i32_2 : i32, i32, i32, i32
  }
  func.func @transform_1(%arg0: i32, %arg1: i32) -> (i32, i32, i32, i32) {
    %c0_i32 = arith.constant 0 : i32
    %c0_i32_0 = arith.constant 0 : i32
    %c0_i32_1 = arith.constant 0 : i32
    %c0_i32_2 = arith.constant 0 : i32
    %c0_i32_3 = arith.constant 0 : i32
    return %c0_i32, %c0_i32_0, %c0_i32_1, %c0_i32_2 : i32, i32, i32, i32
  }
  func.func @transform_2(%arg0: i32, %arg1: i32) -> (i32, i32) {
    %c0_i32 = arith.constant 0 : i32
    %c0_i32_0 = arith.constant 0 : i32
    %c0_i32_1 = arith.constant 0 : i32
    return %c0_i32, %c0_i32_0 : i32, i32
  }
  func.func @transform_3(%arg0: i32, %arg1: i32) -> (i32, i32) {
    %c0_i32 = arith.constant 0 : i32
    %c0_i32_0 = arith.constant 0 : i32
    %c0_i32_1 = arith.constant 0 : i32
    return %c0_i32, %c0_i32_0 : i32, i32
  }
  func.func @transform_4(%arg0: i32, %arg1: i32) -> (i32, i32, i32) {
    %0 = arith.muli %arg0, %arg1 : i32
    %c0_i32 = arith.constant 0 : i32
    %c0_i32_0 = arith.constant 0 : i32
    %c0_i32_1 = arith.constant 0 : i32
    return %0, %c0_i32, %c0_i32_0 : i32, i32, i32
  }
}

</mosaic_0001>

<bundles_post_ra>
// kernel: tpu_custom_call.1
= control target key start
LH: loop header
LB: loop body
LE: loop exit
PB: predicated region body
PF: predicated region fallthrough
CT: control target
= control target key end

     0   :  { %9 = vsyncpa [#allocation6], 0  ;;  %s6194_s0 = inlined_call_operand.vmem [shape: f32[2,18,18,4], index: 0, kind: input, shape index: {}]   ;;  %s6195_s1 = inlined_call_operand.vmem [shape: f32[3,3,4,8], index: 1, kind: input, shape index: {}]   ;;  %s6196_s2 = inlined_call_operand.vmem [shape: f32[8,1], index: 2, kind: input, shape index: {}]   ;;  %s6197_s3 = inlined_call_operand.vmem [shape: f32[8,1], index: 3, kind: input, shape index: {}]   ;;  %s6198_s4 = inlined_call_operand.hbm [shape: f32[2,8,256], index: 4, kind: output, shape index: {}]  }
   0x1   :  { %11 = vsyncpa [#allocation6 + $0x1], 0  ;;  %s4548_s15 = smov 0   ;;  %s4550_s16 = smov 0  }
   0x2   :  { %s4552_s17 = smov 0   ;;  %s4554_s18 = smov 0  }
   0x3   :  { %s4556_s19 = smov 0   ;;  %s4558_s20 = smov 0  }
   0x4   :  { %s4560_s21 = smov 0   ;;  %s4562_s22 = smov 0  }
   0x5 LB: > { %s3276_s23 = sadd.s32 4294967295, %s4519_s22   ;;  %s3277_s24 = sadd.s32 4294967294, %s4519_s22   ;;  %s4519_s22 = sphi %s4562_s22, %s17_s22   ;;  %s4515_s21 = sphi %s4560_s21, %s6416_s21   ;;  %s4511_s20 = sphi %s4558_s20, %s6415_s20   ;;  %s4507_s19 = sphi %s4556_s19, %s6414_s19   ;;  %s4503_s18 = sphi %s4554_s18, %s6413_s18   ;;  %s4499_s17 = sphi %s4552_s17, %s6412_s17   ;;  %s4495_s16 = sphi %s4550_s16, %s6411_s16   ;;  %s4491_s15 = sphi %s4548_s15, %s6410_s15  }
   0x6   : > { %s26_s25 = sadd.s32 1, %s4511_s20  ;;  %s29_s26 = sadd.s32 1, %s4515_s21 }
   0x7   : > { %p27_p0 = scmp.ge.s32.totalorder %s26_s25, 2  ;;  %s128_s27 = smul.u32 %s4511_s20, %s4515_s21 }
   0x8   : > { %p143_p1 = scmp.ne.s32.totalorder %s4499_s17, %s4495_s16  ;;  %p144_p2 = scmp.eq.s32.totalorder %s3276_s23, 3 }
   0x9   : > { %s6418_s25 = smov (%p27_p0, %s26_s25), 0  ;;  %s6420_s26 = smov (!%p27_p0, %s29_s26), %s4515_s21 }
   0xa   : > { %p149_p3 = scmp.ne.s32.totalorder %s4495_s16, %s4491_s15  ;;  %p31_p4 = scmp.ge.s32.totalorder %s6420_s26, 2 }
   0xb   : > { %p150_p5 = scmp.eq.s32.totalorder %s3277_s24, 3  ;;  %p4601_p6 = por %p144_p2, %p143_p1 }
   0xc   : > { %p3280_p7 = scmp.ge.s32.totalorder %s4519_s22, 1  ;;  %s6422_s26 = smov (%p31_p4, %s6420_s26), 0 }
   0xd   : > { %p4608_p8 = por %p150_p5, %p149_p3  ;;  %p191_p9 = scmp.lt.s32.totalorder %s4519_s22, 5 }
   0xe   : > { %s129_s30 = smul.u32 %s6422_s26, %s6418_s25  ;;  %s133_s6 = sadd.s32 1, %s4499_s17 }
   0xf   : > { %p192_p10 = pnand %p3280_p7, %p191_p9 }
  0x10   : > { %s130_s5 = ssub.s32 %s128_s27, %s129_s30  ;;  %s217_s8 = sand.u32 (!%p192_p10), 1, %s4495_s16  }
  0x11   : > { %p131_p11 = scmp.eq.s32.totalorder %s130_s5, 0  ;;  %195 = sbr.rel (%p192_p10) target bundleno = 1117 (0x45d), region = 36 }
  0x12   : > { %s220_s9 = ssub.s32 (!%p192_p10), 1, %s4507_s19  ;;  %s3281_s10 = sshll.u32 (!%p192_p10), %s217_s8, 4 }
  0x13   : > { %s4617_s7 = scalar_select %p131_p11, %s4499_s17, %s133_s6  }
  0x14   : > { %s221_s11 = smul.u32 (!%p192_p10), %s4503_s18, %s220_s9  ;;  %s4630_s27 = scalar_lea.vmem (!%p192_p10), [#allocation5], %s3281_s10 }
  0x15   : > { %p3283_p13 = scmp.ne.s32.totalorder (!%p192_p10), %s4507_s19, 0 }
  0x16   : > { %s222_s12 = sadd.s32 %s4507_s19, %s221_s11 }
  0x17   : > { %p223_p12 = scmp.lt.s32.totalorder %s222_s12, 1 }
  0x18   : > { %235 = sbr.rel (%p3283_p13) target bundleno = 617 (0x269), region = 40 }
  0x19   : > { %s6424_s12 = smov (!%p223_p12, %s222_s12), 1 }
  0x1a   : > { %s4351_s13 = smul.u32 432, %s6424_s12 }
  0x1c   : > { %s4628_s24 = scalar_lea.vmem %s6194_s0, %s4351_s13 }
  0x1d   : > { %v3284_v0 = vld [vmem:[%s6195_s1 + $0x4] sm:$0xf]  ;;  %vm487_vm0 = vcmask 1043456   ;;  %v4640_v2 = vld [vmem:[%s4628_s24 + $0x8] sm:$0xff]  ;;  %vm339_vm1 = vcmask 1046528   ;;  %vm422_vm2 = vcmask 31744  }
  0x1e   : > { %v4637_v1 = vld [vmem:[%s4628_s24] sm:$0xff]  ;;  %4349 = vmatprep.subr.msk.mxu1 %vm487_vm0, %v3284_v0  ;;  %3899 = vmatprep.subr.msk.mxu0 %vm487_vm0, %v3284_v0  ;;  %v341_v4 = vrot.slane %v4640_v2, 1  ;;  %v4650_v6 = vld [vmem:[%s4628_s24 + $0xc8] sm:$0xff]  ;;  %v4653_v7 = vld [vmem:[%s4628_s24 + $0x18] sm:$0xff]  ;;  %vm1008_vm3 = vcmask 1045504  }
  0x1f   : > { %v340_v3 = vrot.slane %v4637_v1, 1  ;;  %v4647_v5 = vld [vmem:[%s4628_s24 + $0xc0] sm:$0xff]  ;;  %4350 = vmatpush3.msk.msra.mxu1 %vm487_vm0, %v3284_v0  ;;  %3900 = vmatpush3.msk.msra.mxu0 %vm487_vm0, %v3284_v0  ;;  %v381_v9 = vrot.slane %v4650_v6, 1  ;;  %v4663_v11 = vld [vmem:[%s4628_s24 + $0x10] sm:$0x3]  ;;  %v345_v19 = vrot.slane %v4653_v7, 1 }
  0x20   : > { %v380_v8 = vrot.slane %v4647_v5, 1  ;;  %v290_v10 = vld [vmem:[%s6195_s1] sm:$0xf]  ;;  %v343_v13 = vrot.slane %v4663_v11, 1  ;;  %v4669_v14 = vld [vmem:[%s4628_s24 + $0xd0] sm:$0x3] }
  0x21   : > { %v342_v12 = vsel %vm339_vm1, %v340_v3, %v341_v4  ;;  %3949 = vmatprep.subr.msk.mxu1 %vm487_vm0, %v290_v10  ;;  %v3351_v15 = vld [vmem:[%s6195_s1 + $0x8] sm:$0xf]  ;;  %v383_v17 = vrot.slane %v4669_v14, 1  ;;  %v4681_v18 = vld [vmem:[%s4628_s24 + $0x20] sm:$0xff]  ;;  %v4685_v20 = vld [vmem:[%s4628_s24 + $0xd8] sm:$0xff] }
  0x22   : > { %3901 = vmatprep.mubr.msk.f32.mxu0 %vm422_vm2, %v342_v12  ;;  %v4676_v16 = vsel %vm339_vm1, %v380_v8, %v381_v9  ;;  %3999 = vmatprep.subr.msk.mxu0 %vm487_vm0, %v3351_v15  ;;  %v4688_v21 = vld [vmem:[%s4628_s24 + $0xe0] sm:$0xff]  ;;  %v344_v22 = vsel %vm339_vm1, %v341_v4, %v343_v13  ;;  %v346_v23 = vrot.slane %v4681_v18, 1  ;;  %v385_v24 = vrot.slane %v4685_v20, 1  ;;  %v4697_v26 = vld [vmem:[%s4628_s24 + $0x28] sm:$0x3]  ;;  %v4700_v27 = vld [vmem:[%s4628_s24 + $0x30] sm:$0xff] }
  0x23   : > { %6282 = vst [vmem:[#allocation8_spill] sm:$0xff] %v4676_v16  ;;  %3925 = vmatprep.mubr.msk.f32.mxu1 %vm422_vm2, %v4676_v16  ;;  %v386_v25 = vrot.slane %v4688_v21, 1  ;;  %3902 = vmatmul.mubr.msk.f32.vlgmr.msra.gmra.mxu0 %vm422_vm2, %v344_v22  ;;  %v4704_v28 = vsel %vm339_vm1, %v381_v9, %v383_v17  ;;  %v348_v29 = vrot.slane %v4697_v26, 1  ;;  %v4708_v30 = vld [vmem:[%s4628_s24 + $0xe8] sm:$0x3]  ;;  %v4711_v31 = vld [vmem:[%s4628_s24 + $0x38] sm:$0xff] }
  0x24   : > { %6283 = vst [vmem:[#allocation9_spill] sm:$0xff] %v4704_v28  ;;  %v350_v32 = vrot.slane %v4700_v27, 1  ;;  %v4715_v33 = vld [vmem:[%s4628_s24 + $0xf0] sm:$0xff]  ;;  %3926 = vmatmul.mubr.msk.f32.vlgmr.msra.gmra.mxu1 %vm422_vm2, %v4704_v28  ;;  %4000 = vmatpush3.msk.msra.mxu0 %vm487_vm0, %v3351_v15  ;;  %v4721_v34 = vsel %vm339_vm1, %v345_v19, %v346_v23  ;;  %v388_v36 = vrot.slane %v4708_v30, 1  ;;  %v351_v37 = vrot.slane %v4711_v31, 1  ;;  %v4729_v38 = vld [vmem:[%s4628_s24 + $0xf8] sm:$0xff] }
  0x25   : > { %6284 = vst [vmem:[#allocation10_spill] sm:$0xff] %v4721_v34  ;;  %v4724_v35 = vsel %vm339_vm1, %v385_v24, %v386_v25  ;;  %v4732_v39 = vld [vmem:[%s4628_s24 + $0x40] sm:$0x3]  ;;  %v4735_v40 = vld [vmem:[%s4628_s24 + $0x48] sm:$0xff]  ;;  %3950 = vmatpush3.msk.msra.mxu1 %vm487_vm0, %v290_v10  ;;  %3904 = vmatprep.mubr.msk.f32.mxu0 %vm422_vm2, %v4721_v34  ;;  %v4741_v41 = vsel %vm339_vm1, %v346_v23, %v348_v29  ;;  %v390_v42 = vrot.slane %v4715_v33, 1  ;;  %v391_v43 = vrot.slane %v4729_v38, 1 }
  0x26   : > { %6285 = vst [vmem:[#allocation11_spill] sm:$0xff] %v4724_v35  ;;  %6286 = vst [vmem:[#allocation12_spill] sm:$0xff] %v4741_v41  ;;  %v353_v44 = vrot.slane %v4732_v39, 1  ;;  %v4747_v45 = vld [vmem:[%s4628_s24 + $0x100] sm:$0x3]  ;;  %v4750_v46 = vld [vmem:[%s4628_s24 + $0x50] sm:$0xff]  ;;  %3928 = vmatprep.mubr.msk.f32.mxu1 %vm422_vm2, %v4724_v35  ;;  %v4755_v47 = vsel %vm339_vm1, %v386_v25, %v388_v36  ;;  %v4758_v48 = vsel %vm339_vm1, %v350_v32, %v351_v37 }
  0x27   : > { %6287 = vst [vmem:[#allocation13_spill] sm:$0xff] %v4755_v47  ;;  %6288 = vst [vmem:[#allocation14_spill] sm:$0xff] %v4758_v48  ;;  %v393_v49 = vrot.slane %v4747_v45, 1  ;;  %v355_v50 = vrot.slane %v4735_v40, 1  ;;  %v4763_v51 = vld [vmem:[%s4628_s24 + $0x108] sm:$0xff]  ;;  %v4766_v52 = vld [vmem:[%s4628_s24 + $0x110] sm:$0xff]  ;;  %3905 = vmatmul.mubr.msk.f32.gmra.mxu0 %vm422_vm2, %v4741_v41  ;;  %v4774_v54 = vsel %vm339_vm1, %v390_v42, %v391_v43 }
  0x28   : > { %v4769_v53 = vld [vmem:[%s4628_s24 + $0x58] sm:$0x3]  ;;  %6289 = vst [vmem:[#allocation15_spill] sm:$0xff] %v4774_v54  ;;  %v356_v55 = vrot.slane %v4750_v46, 1  ;;  %v395_v56 = vrot.slane %v4763_v51, 1  ;;  %v4782_v58 = vld [vmem:[%s4628_s24 + $0x60] sm:$0xff]  ;;  %3929 = vmatmul.mubr.msk.f32.gmra.mxu1 %vm422_vm2, %v4755_v47  ;;  %3907 = vmatprep.mubr.msk.f32.mxu0 %vm422_vm2, %v4758_v48  ;;  %v4792_v60 = vsel %vm339_vm1, %v351_v37, %v353_v44 }
  0x29   : > { %v4779_v57 = vld [vmem:[%s4628_s24 + $0x118] sm:$0x3]  ;;  %v4785_v59 = vld [vmem:[%s4628_s24 + $0x68] sm:$0xff]  ;;  %6290 = vst [vmem:[#allocation16_spill] sm:$0xff] %v4792_v60  ;;  %v4795_v61 = vsel %vm339_vm1, %v391_v43, %v393_v49  ;;  %v396_v62 = vrot.slane %v4766_v52, 1  ;;  %v358_v63 = vrot.slane %v4769_v53, 1  ;;  %3931 = vmatprep.mubr.msk.f32.mxu1 %vm422_vm2, %v4774_v54 }
  0x2a   : > { %6291 = vst [vmem:[#allocation17_spill] sm:$0xff] %v4795_v61  ;;  %v4800_v0 = vld [vmem:[%s4628_s24 + $0x120] sm:$0xff]  ;;  %v4803_v3 = vld [vmem:[%s4628_s24 + $0x128] sm:$0xff]  ;;  %v4808_v4 = vsel %vm339_vm1, %v355_v50, %v356_v55  ;;  %v398_v8 = vrot.slane %v4779_v57, 1  ;;  %v360_v9 = vrot.slane %v4782_v58, 1  ;;  %v361_v10 = vrot.slane %v4785_v59, 1 }
  0x2b   : > { %6292 = vst [vmem:[#allocation18_spill] sm:$0xff] %v4808_v4  ;;  %v4814_v12 = vld [vmem:[%s4628_s24 + $0x70] sm:$0x3]  ;;  %v4817_v13 = vsel %vm339_vm1, %v395_v56, %v396_v62  ;;  %v400_v15 = vrot.slane %v4800_v0, 1  ;;  %v401_v17 = vrot.slane %v4803_v3, 1  ;;  %v4825_v22 = vld [vmem:[%s4628_s24 + $0x78] sm:$0xff]  ;;  %3908 = vmatmul.mubr.msk.f32.gmra.mxu0 %vm422_vm2, %v4792_v60  ;;  %v4843_v29 = vsel %vm339_vm1, %v356_v55, %v358_v63 }
  0x2c   : > { %6293 = vst [vmem:[#allocation19_spill] sm:$0xff] %v4817_v13  ;;  %v4822_v19 = vld [vmem:[%s4628_s24 + $0x130] sm:$0x3]  ;;  %v4828_v23 = vld [vmem:[%s4628_s24 + $0x80] sm:$0xff]  ;;  %v4833_v24 = vld [vmem:[%s4628_s24 + $0x138] sm:$0xff]  ;;  %3932 = vmatmul.mubr.msk.f32.gmra.mxu1 %vm422_vm2, %v4795_v61  ;;  %3910 = vmatprep.mubr.msk.f32.mxu0 %vm422_vm2, %v4808_v4  ;;  %v363_v32 = vrot.slane %v4814_v12, 1  ;;  %v4850_v37 = vsel %vm339_vm1, %v396_v62, %v398_v8  ;;  %v4853_v42 = vsel %vm339_vm1, %v360_v9, %v361_v10 }
  0x2d   : > { %v4836_v25 = vld [vmem:[%s4628_s24 + $0x140] sm:$0xff]  ;;  %6294 = vst [vmem:[#allocation20_spill] sm:$0xff] %v4843_v29  ;;  %v403_v36 = vrot.slane %v4822_v19, 1  ;;  %3934 = vmatprep.mubr.msk.f32.mxu1 %vm422_vm2, %v4817_v13  ;;  %6295 = vst [vmem:[#allocation21_spill] sm:$0xff] %v4850_v37  ;;  %v365_v43 = vrot.slane %v4825_v22, 1  ;;  %v366_v44 = vrot.slane %v4828_v23, 1  ;;  %v4864_v55 = vsel %vm339_vm1, %v400_v15, %v401_v17 }
  0x2e   : > { %6296 = vst [vmem:[#allocation22_spill] sm:$0xff] %v4853_v42  ;;  %v4858_v49 = vld [vmem:[%s4628_s24 + $0x88] sm:$0x3]  ;;  %6297 = vst [vmem:[#allocation23_spill] sm:$0xff] %v4864_v55  ;;  %v405_v56 = vrot.slane %v4833_v24, 1  ;;  %v406_v62 = vrot.slane %v4836_v25, 1  ;;  %v4887_v15 = vsel %vm339_vm1, %v361_v10, %v363_v32 }
  0x2f   : > { %v4861_v50 = vld [vmem:[%s4628_s24 + $0x148] sm:$0x3]  ;;  %v4869_v63 = vld [vmem:[%s4628_s24 + $0x90] sm:$0xff]  ;;  %v4872_v8 = vld [vmem:[%s4628_s24 + $0x98] sm:$0xff]  ;;  %3911 = vmatmul.mubr.msk.f32.gmra.mxu0 %vm422_vm2, %v4843_v29  ;;  %6299 = vst [vmem:[#allocation25_spill] sm:$0xff] %v4887_v15  ;;  %v368_v61 = vrot.slane %v4858_v49, 1  ;;  %v4900_v35 = vsel %vm339_vm1, %v365_v43, %v366_v44 }
  0x30   : > { %v4877_v9 = vld [vmem:[%s4628_s24 + $0x150] sm:$0xff]  ;;  %v4880_v13 = vld [vmem:[%s4628_s24 + $0x158] sm:$0xff]  ;;  %3935 = vmatmul.mubr.msk.f32.gmra.mxu1 %vm422_vm2, %v4850_v37  ;;  %3913 = vmatprep.mubr.msk.f32.mxu0 %vm422_vm2, %v4853_v42  ;;  %v408_v54 = vrot.slane %v4861_v50, 1  ;;  %v4892_v47 = vld [vmem:[%s4628_s24 + $0xa0] sm:$0x3]  ;;  %v4897_v37 = vsel %vm339_vm1, %v401_v17, %v403_v36  ;;  %6301 = vst [vmem:[#allocation27_spill] sm:$0xff] %v4900_v35 }
  0x31   : > { %6298 = vst [vmem:[#allocation24_spill] sm:$0xff] %v4880_v13  ;;  %3937 = vmatprep.mubr.msk.f32.mxu1 %vm422_vm2, %v4864_v55  ;;  %6300 = vst [vmem:[#allocation26_spill] sm:$0xff] %v4897_v37  ;;  %v370_v10 = vrot.slane %v4869_v63, 1  ;;  %v371_v32 = vrot.slane %v4872_v8, 1  ;;  %v4905_v28 = vld [vmem:[%s4628_s24 + $0x160] sm:$0x3]  ;;  %v4913_v55 = vsel %vm339_vm1, %v405_v56, %v406_v62  ;;  %v4942_v60 = vsel %vm339_vm1, %v366_v44, %v368_v61 }
  0x32   : > { %6302 = vst [vmem:[#allocation28_spill] sm:$0xff] %v4905_v28  ;;  %v4910_v16 = vld [vmem:[%s6195_s1 + $0xc] sm:$0xf]  ;;  %6303 = vst [vmem:[#allocation29_spill] sm:$0xff] %v4913_v55  ;;  %v410_v17 = vrot.slane %v4877_v9, 1  ;;  %v411_v36 = vrot.slane %v4880_v13, 1  ;;  %v4949_v41 = vsel %vm339_vm1, %v406_v62, %v408_v54 }
  0x33   : > { %v4918_v43 = vld [vmem:[%s4628_s24 + $0xa8] sm:$0xff]  ;;  %v4921_v42 = vld [vmem:[%s4628_s24 + $0xb0] sm:$0xff]  ;;  %4049 = vmatprep.subr.msk.mxu1 %vm487_vm0, %v4910_v16  ;;  %3914 = vmatmul.mubr.msk.f32.gmra.mxu0 %vm422_vm2, %v4887_v15  ;;  %6304 = vst [vmem:[#allocation30_spill] sm:$0xff] %v4942_v60  ;;  %v373_v48 = vrot.slane %v4892_v47, 1  ;;  %v413_v15 = vrot.slane %v4905_v28, 1  ;;  %6305 = vst [vmem:[#allocation31_spill] sm:$0xff] %v4949_v41  ;;  %v4952_v34 = vsel %vm339_vm1, %v370_v10, %v371_v32 }
  0x34   : > { %v3419_v29 = vld [vmem:[%s6195_s1 + $0x10] sm:$0xf]  ;;  %v4931_v56 = vld [vmem:[%s4628_s24 + $0x168] sm:$0xff]  ;;  %3938 = vmatmul.mubr.msk.f32.gmra.mxu1 %vm422_vm2, %v4897_v37  ;;  %3916 = vmatprep.mubr.msk.f32.mxu0 %vm422_vm2, %v4900_v35  ;;  %6306 = vst [vmem:[#allocation32_spill] sm:$0xff] %v4952_v34  ;;  %v375_v37 = vrot.slane %v4918_v43, 1  ;;  %v376_v35 = vrot.slane %v4921_v42, 1  ;;  %v4960_v61 = vsel %vm339_vm1, %v410_v17, %v411_v36 }
  0x35   : > { %v4934_v4 = vld [vmem:[%s4628_s24 + $0x170] sm:$0xff]  ;;  %4099 = vmatprep.subr.msk.mxu0 %vm487_vm0, %v3419_v29  ;;  %3940 = vmatprep.mubr.msk.f32.mxu1 %vm422_vm2, %v4913_v55  ;;  %v4957_v13 = vld [vmem:[%s4628_s24 + $0xb8] sm:$0x3]  ;;  %6307 = vst [vmem:[#allocation33_spill] sm:$0xff] %v4960_v61  ;;  %v415_v44 = vrot.slane %v4931_v56, 1  ;;  %v4974_v54 = vsel %vm339_vm1, %v371_v32, %v373_v48  ;;  %v4977_v62 = vsel %vm339_vm1, %v411_v36, %v413_v15  ;;  %v1012_v15 = vrot.slane %v4663_v11, 2 }
  0x36   : > { %v416_v28 = vrot.slane %v4934_v4, 1  ;;  %v4965_v55 = vld [vmem:[%s4628_s24 + $0x178] sm:$0x3]  ;;  %6308 = vst [vmem:[#allocation34_spill] sm:$0xff] %v4974_v54  ;;  %6309 = vst [vmem:[#allocation35_spill] sm:$0xff] %v4977_v62  ;;  %v378_v10 = vrot.slane %v4957_v13, 1  ;;  %v4983_v17 = vsel %vm339_vm1, %v375_v37, %v376_v35 }
  0x37   : > { %3917 = vmatmul.mubr.msk.f32.gmra.mxu0 %vm422_vm2, %v4942_v60  ;;  %6310 = vst [vmem:[#allocation36_spill] sm:$0xff] %v4983_v17  ;;  %v418_v60 = vrot.slane %v4965_v55, 1  ;;  %v1014_v11 = vrot.slane %v4653_v7, 2 }
  0x38   : > { %3941 = vmatmul.mubr.msk.f32.gmra.mxu1 %vm422_vm2, %v4949_v41  ;;  %3919 = vmatprep.mubr.msk.f32.mxu0 %vm422_vm2, %v4952_v34  ;;  %v1009_v41 = vrot.slane %v4637_v1, 2  ;;  %v1010_v34 = vrot.slane %v4640_v2, 2  ;;  %v4989_v48 = vsel %vm339_vm1, %v415_v44, %v416_v28  ;;  %v4999_v37 = vsel %vm339_vm1, %v376_v35, %v378_v10 }
  0x39   : > { %3943 = vmatprep.mubr.msk.f32.mxu1 %vm422_vm2, %v4960_v61  ;;  %6311 = vst [vmem:[#allocation37_spill] sm:$0xff] %v4989_v48  ;;  %6312 = vst [vmem:[#allocation38_spill] sm:$0xff] %v4999_v37  ;;  %v5004_v32 = vsel %vm339_vm1, %v416_v28, %v418_v60  ;;  %v1015_v44 = vrot.slane %v4681_v18, 2  ;;  %v1017_v10 = vrot.slane %v4697_v26, 2  ;;  %v1019_v28 = vrot.slane %v4700_v27, 2 }
  0x3a   : > { %6313 = vst [vmem:[#allocation39_spill] sm:$0xff] %v5004_v32  ;;  %v1011_v36 = vsel %vm1008_vm3, %v1009_v41, %v1010_v34  ;;  %v1013_v35 = vsel %vm1008_vm3, %v1010_v34, %v1012_v15  ;;  %v1020_v41 = vrot.slane %v4711_v31, 2  ;;  %v1022_v26 = vrot.slane %v4732_v39, 2  ;;  %v5039_v34 = vld [vmem:[%s6195_s1 + $0x18] sm:$0xf] }
  0x3b   : > { %3920 = vmatmul.mubr.msk.f32.gmra.mxu0 %vm422_vm2, %v4974_v54  ;;  %v5022_v60 = vsel %vm1008_vm3, %v1014_v11, %v1015_v44  ;;  %v1025_v15 = vrot.slane %v4750_v46, 2  ;;  %v1027_v39 = vrot.slane %v4769_v53, 2 }
  0x3c   : > { %3944 = vmatmul.mubr.msk.f32.gmra.mxu1 %vm422_vm2, %v4977_v62  ;;  %3922 = vmatprep.mubr.msk.f32.mxu0 %vm422_vm2, %v4983_v17 }
  0x3d   : > { %3946 = vmatprep.mubr.msk.f32.mxu1 %vm422_vm2, %v4989_v48  ;;  %v5080_v53 = vsel %vm1008_vm3, %v1025_v15, %v1027_v39  ;;  %v1039_v39 = vrot.slane %v4869_v63, 2 }
  0x3f   : > { %3923 = vmatmul.mubr.msk.f32.gmra.mxu0 %vm422_vm2, %v4999_v37 }
  0x40   : > { %3947 = vmatmul.mubr.msk.f32.gmra.mxu1 %vm422_vm2, %v5004_v32  ;;  %4001 = vmatprep.mubr.msk.f32.mxu0 %vm422_vm2, %v1011_v36  ;;  %v5027_v36 = vld [vmem:[%s6195_s1 + $0x14] sm:$0xf] }
  0x41   : > { %3951 = vmatprep.mubr.msk.f32.mxu1 %vm422_vm2, %v4637_v1  ;;  %v5033_v1 = vsel %vm1008_vm3, %v1015_v44, %v1017_v10  ;;  %v1029_v44 = vrot.slane %v4782_v58, 2  ;;  %v1032_v10 = vrot.slane %v4814_v12, 2 }
  0x43   : > { %4002 = vmatmul.mubr.msk.f32.vlgmr.msra.gmra.mxu0 %vm422_vm2, %v1013_v35  ;;  %v1030_v35 = vrot.slane %v4785_v59, 2 }
  0x44   : > { %3952 = vmatmul.mubr.msk.f32.vlgmr.msra.gmra.mxu1 %vm422_vm2, %v4640_v2  ;;  %4100 = vmatpush3.msk.msra.mxu0 %vm487_vm0, %v3419_v29  ;;  %v5046_v2 = vsel %vm1008_vm3, %v1019_v28, %v1020_v41  ;;  %v1024_v29 = vrot.slane %v4735_v40, 2 }
  0x45   : > { %4050 = vmatpush3.msk.msra.mxu1 %vm487_vm0, %v4910_v16  ;;  %3954 = vmatprep.mubr.msk.f32.mxu1 %vm422_vm2, %v4653_v7  ;;  %v5063_v16 = vsel %vm1008_vm3, %v1020_v41, %v1022_v26  ;;  %v5086_v28 = vsel %vm1008_vm3, %v1029_v44, %v1030_v35  ;;  %v1034_v41 = vrot.slane %v4825_v22, 2  ;;  %v1035_v26 = vrot.slane %v4828_v23, 2 }
  0x46   : > { %4004 = vmatprep.mubr.msk.f32.mxu0 %vm422_vm2, %v5022_v60  ;;  %4149 = vmatprep.subr.msk.mxu1 %vm487_vm0, %v5027_v36  ;;  %v5069_v11 = vsel %vm1008_vm3, %v1024_v29, %v1025_v15  ;;  %v5097_v12 = vsel %vm1008_vm3, %v1030_v35, %v1032_v10  ;;  %v1037_v29 = vrot.slane %v4858_v49, 2  ;;  %v1040_v44 = vrot.slane %v4872_v8, 2 }
  0x47   : > { %4005 = vmatmul.mubr.msk.f32.gmra.mxu0 %vm422_vm2, %v5033_v1  ;;  %4199 = vmatprep.subr.msk.mxu0 %vm487_vm0, %v5039_v34  ;;  %6314 = vst [vmem:[#allocation40_spill] sm:$0xff] %v5097_v12  ;;  %v5103_v15 = vsel %vm1008_vm3, %v1034_v41, %v1035_v26  ;;  %v1042_v35 = vrot.slane %v4892_v47, 2  ;;  %v1044_v41 = vrot.slane %v4918_v43, 2 }
  0x48   : > { %3955 = vmatmul.mubr.msk.f32.gmra.mxu1 %vm422_vm2, %v4681_v18  ;;  %4007 = vmatprep.mubr.msk.f32.mxu0 %vm422_vm2, %v5046_v2  ;;  %v5114_v49 = vsel %vm1008_vm3, %v1035_v26, %v1037_v29  ;;  %v5120_v10 = vsel %vm1008_vm3, %v1039_v39, %v1040_v44  ;;  %v1047_v26 = vrot.slane %v4957_v13, 2  ;;  %v1049_v39 = vrot.slane %v4647_v5, 2 }
  0x49   : > { %3957 = vmatprep.mubr.msk.f32.mxu1 %vm422_vm2, %v4700_v27  ;;  %6315 = vst [vmem:[#allocation41_spill] sm:$0xff] %v5114_v49  ;;  %v5131_v47 = vsel %vm1008_vm3, %v1040_v44, %v1042_v35  ;;  %v1052_v44 = vrot.slane %v4669_v14, 2 }
  0x4a   : > { %6316 = vst [vmem:[#allocation42_spill] sm:$0xff] %v5131_v47 }
  0x4b   : > { %4008 = vmatmul.mubr.msk.f32.gmra.mxu0 %vm422_vm2, %v5063_v16 }
  0x4c   : > { %3958 = vmatmul.mubr.msk.f32.gmra.mxu1 %vm422_vm2, %v4711_v31  ;;  %4010 = vmatprep.mubr.msk.f32.mxu0 %vm422_vm2, %v5069_v11 }
  0x4d   : > { %3960 = vmatprep.mubr.msk.f32.mxu1 %vm422_vm2, %v4735_v40 }
  0x4f   : > { %4011 = vmatmul.mubr.msk.f32.gmra.mxu0 %vm422_vm2, %v5080_v53 }
  0x50   : > { %3961 = vmatmul.mubr.msk.f32.gmra.mxu1 %vm422_vm2, %v4750_v46  ;;  %4013 = vmatprep.mubr.msk.f32.mxu0 %vm422_vm2, %v5086_v28 }
  0x51   : > { %3963 = vmatprep.mubr.msk.f32.mxu1 %vm422_vm2, %v4782_v58 }
  0x53   : > { %4014 = vmatmul.mubr.msk.f32.gmra.mxu0 %vm422_vm2, %v5097_v12  ;;  %v1045_v12 = vrot.slane %v4921_v42, 2 }
  0x54   : > { %3964 = vmatmul.mubr.msk.f32.gmra.mxu1 %vm422_vm2, %v4785_v59  ;;  %4016 = vmatprep.mubr.msk.f32.mxu0 %vm422_vm2, %v5103_v15 }
  0x55   : > { %3966 = vmatprep.mubr.msk.f32.mxu1 %vm422_vm2, %v4825_v22  ;;  %v5137_v29 = vsel %vm1008_vm3, %v1044_v41, %v1045_v12  ;;  %v5148_v13 = vsel %vm1008_vm3, %v1045_v12, %v1047_v26  ;;  %v1054_v41 = vrot.slane %v4685_v20, 2  ;;  %v1057_v12 = vrot.slane %v4708_v30, 2 }
  0x56   : > { %6317 = vst [vmem:[#allocation43_spill] sm:$0xff] %v5148_v13 }
  0x57   : > { %4017 = vmatmul.mubr.msk.f32.gmra.mxu0 %vm422_vm2, %v5114_v49  ;;  %v1050_v49 = vrot.slane %v4650_v6, 2 }
  0x58   : > { %3967 = vmatmul.mubr.msk.f32.gmra.mxu1 %vm422_vm2, %v4828_v23  ;;  %4019 = vmatprep.mubr.msk.f32.mxu0 %vm422_vm2, %v5120_v10 }
  0x59   : > { %3969 = vmatprep.mubr.msk.f32.mxu1 %vm422_vm2, %v4869_v63  ;;  %v5154_v35 = vsel %vm1008_vm3, %v1049_v39, %v1050_v49  ;;  %v5165_v14 = vsel %vm1008_vm3, %v1050_v49, %v1052_v44  ;;  %v1059_v39 = vrot.slane %v4715_v33, 2  ;;  %v1062_v49 = vrot.slane %v4747_v45, 2 }
  0x5a   : > { %6318 = vst [vmem:[#allocation44_spill] sm:$0xff] %v5165_v14 }
  0x5b   : > { %4020 = vmatmul.mubr.msk.f32.gmra.mxu0 %vm422_vm2, %v5131_v47  ;;  %v1055_v47 = vrot.slane %v4688_v21, 2 }
  0x5c   : > { %3970 = vmatmul.mubr.msk.f32.gmra.mxu1 %vm422_vm2, %v4872_v8  ;;  %4022 = vmatprep.mubr.msk.f32.mxu0 %vm422_vm2, %v5137_v29 }
  0x5d   : > { %3972 = vmatprep.mubr.msk.f32.mxu1 %vm422_vm2, %v4918_v43  ;;  %v5171_v26 = vsel %vm1008_vm3, %v1054_v41, %v1055_v47  ;;  %v5182_v30 = vsel %vm1008_vm3, %v1055_v47, %v1057_v12  ;;  %v1064_v41 = vrot.slane %v4763_v51, 2  ;;  %v1067_v47 = vrot.slane %v4779_v57, 2 }
  0x5e   : > { %6319 = vst [vmem:[#allocation45_spill] sm:$0xff] %v5182_v30 }
  0x5f   : > { %4023 = vmatmul.mubr.msk.f32.gmra.mxu0 %vm422_vm2, %v5148_v13  ;;  %v1060_v13 = vrot.slane %v4729_v38, 2 }
  0x60   : > { %3973 = vmatmul.mubr.msk.f32.gmra.mxu1 %vm422_vm2, %v4921_v42  ;;  %4025 = vmatprep.mubr.msk.f32.mxu0 %vm422_vm2, %v5154_v35 }
  0x61   : > { %3975 = vmatprep.mubr.msk.f32.mxu1 %vm422_vm2, %v4647_v5  ;;  %v5188_v44 = vsel %vm1008_vm3, %v1059_v39, %v1060_v13  ;;  %v5199_v45 = vsel %vm1008_vm3, %v1060_v13, %v1062_v49  ;;  %v1069_v39 = vrot.slane %v4800_v0, 2  ;;  %v1072_v13 = vrot.slane %v4822_v19, 2 }
  0x62   : > { %6320 = vst [vmem:[#allocation46_spill] sm:$0xff] %v5199_v45 }
  0x63   : > { %4026 = vmatmul.mubr.msk.f32.gmra.mxu0 %vm422_vm2, %v5165_v14  ;;  %v1065_v14 = vrot.slane %v4766_v52, 2 }
  0x64   : > { %3976 = vmatmul.mubr.msk.f32.gmra.mxu1 %vm422_vm2, %v4650_v6  ;;  %4028 = vmatprep.mubr.msk.f32.mxu0 %vm422_vm2, %v5171_v26 }
  0x65   : > { %3978 = vmatprep.mubr.msk.f32.mxu1 %vm422_vm2, %v4685_v20  ;;  %v5205_v12 = vsel %vm1008_vm3, %v1064_v41, %v1065_v14  ;;  %v5216_v57 = vsel %vm1008_vm3, %v1065_v14, %v1067_v47  ;;  %v1074_v41 = vrot.slane %v4833_v24, 2  ;;  %v1077_v14 = vrot.slane %v4861_v50, 2 }
  0x66   : > { %6321 = vst [vmem:[#allocation47_spill] sm:$0xff] %v5205_v12  ;;  %6322 = vst [vmem:[#allocation48_spill] sm:$0xff] %v5216_v57 }
  0x67   : > { %4029 = vmatmul.mubr.msk.f32.gmra.mxu0 %vm422_vm2, %v5182_v30  ;;  %v1070_v30 = vrot.slane %v4803_v3, 2 }
  0x68   : > { %3979 = vmatmul.mubr.msk.f32.gmra.mxu1 %vm422_vm2, %v4688_v21  ;;  %4031 = vmatprep.mubr.msk.f32.mxu0 %vm422_vm2, %v5188_v44 }
  0x69   : > { %3981 = vmatprep.mubr.msk.f32.mxu1 %vm422_vm2, %v4715_v33  ;;  %v5222_v49 = vsel %vm1008_vm3, %v1069_v39, %v1070_v30  ;;  %v5233_v19 = vsel %vm1008_vm3, %v1070_v30, %v1072_v13  ;;  %v1079_v39 = vrot.slane %v4877_v9, 2  ;;  %v6326_v30 = vld [vmem:[#allocation28_spill] sm:$0xff] }
  0x6a   : > { %6323 = vst [vmem:[#allocation49_spill] sm:$0xff] %v5222_v49  ;;  %6324 = vst [vmem:[#allocation50_spill] sm:$0xff] %v5233_v19  ;;  %v1082_v13 = vrot.slane %v6326_v30, 2  ;;  %v5308_v30 = vld [vmem:[%s6195_s1 + $0x20] sm:$0xf] }
  0x6b   : > { %4032 = vmatmul.mubr.msk.f32.gmra.mxu0 %vm422_vm2, %v5199_v45  ;;  %v1075_v45 = vrot.slane %v4836_v25, 2 }
  0x6c   : > { %3982 = vmatmul.mubr.msk.f32.gmra.mxu1 %vm422_vm2, %v4729_v38  ;;  %4034 = vmatprep.mubr.msk.f32.mxu0 %vm422_vm2, %v5205_v12 }
  0x6d   : > { %3984 = vmatprep.mubr.msk.f32.mxu1 %vm422_vm2, %v4763_v51  ;;  %v5239_v47 = vsel %vm1008_vm3, %v1074_v41, %v1075_v45  ;;  %v5250_v50 = vsel %vm1008_vm3, %v1075_v45, %v1077_v14  ;;  %v1087_v14 = vrot.slane %v4965_v55, 2  ;;  %v6328_v55 = vld [vmem:[#allocation10_spill] sm:$0xff] }
  0x6f   : > { %4035 = vmatmul.mubr.msk.f32.gmra.mxu0 %vm422_vm2, %v5216_v57  ;;  %v6325_v57 = vld [vmem:[#allocation24_spill] sm:$0xff] }
  0x70   : > { %3985 = vmatmul.mubr.msk.f32.gmra.mxu1 %vm422_vm2, %v4766_v52  ;;  %4037 = vmatprep.mubr.msk.f32.mxu0 %vm422_vm2, %v5222_v49  ;;  %v1080_v12 = vrot.slane %v6325_v57, 2  ;;  %v1084_v49 = vrot.slane %v4931_v56, 2 }
  0x71   : > { %3987 = vmatprep.mubr.msk.f32.mxu1 %vm422_vm2, %v4800_v0 }
  0x72   : > { %v5256_v41 = vsel %vm1008_vm3, %v1079_v39, %v1080_v12  ;;  %v5267_v45 = vsel %vm1008_vm3, %v1080_v12, %v1082_v13  ;;  %v6334_v13 = vld [vmem:[#allocation22_spill] sm:$0xff] }
  0x73   : > { %4038 = vmatmul.mubr.msk.f32.gmra.mxu0 %vm422_vm2, %v5233_v19  ;;  %v1085_v19 = vrot.slane %v4934_v4, 2 }
  0x74   : > { %3988 = vmatmul.mubr.msk.f32.gmra.mxu1 %vm422_vm2, %v4803_v3  ;;  %4040 = vmatprep.mubr.msk.f32.mxu0 %vm422_vm2, %v5239_v47 }
  0x75   : > { %3990 = vmatprep.mubr.msk.f32.mxu1 %vm422_vm2, %v4833_v24  ;;  %v5273_v39 = vsel %vm1008_vm3, %v1084_v49, %v1085_v19  ;;  %v5282_v12 = vsel %vm1008_vm3, %v1085_v19, %v1087_v14  ;;  %v6329_v49 = vld [vmem:[#allocation12_spill] sm:$0xff]  ;;  %v5299_v19 = vld [vmem:[%s6195_s1 + $0x1c] sm:$0xf] }
  0x76   : > { %6327 = vst [vmem:[#allocation24_spill] sm:$0xff] %v5282_v12  ;;  %v6335_v14 = vld [vmem:[#allocation25_spill] sm:$0xff] }
  0x77   : > { %4041 = vmatmul.mubr.msk.f32.gmra.mxu0 %vm422_vm2, %v5250_v50 }
  0x78   : > { %3991 = vmatmul.mubr.msk.f32.gmra.mxu1 %vm422_vm2, %v4836_v25  ;;  %4043 = vmatprep.mubr.msk.f32.mxu0 %vm422_vm2, %v5256_v41 }
  0x79   : > { %3993 = vmatprep.mubr.msk.f32.mxu1 %vm422_vm2, %v4877_v9 }
  0x7b   : > { %4044 = vmatmul.mubr.msk.f32.gmra.mxu0 %vm422_vm2, %v5267_v45 }
  0x7c   : > { %3994 = vmatmul.mubr.msk.f32.gmra.mxu1 %vm422_vm2, %v6325_v57  ;;  %4046 = vmatprep.mubr.msk.f32.mxu0 %vm422_vm2, %v5273_v39 }
  0x7d   : > { %3996 = vmatprep.mubr.msk.f32.mxu1 %vm422_vm2, %v4931_v56 }
  0x7f   : > { %4047 = vmatmul.mubr.msk.f32.gmra.mxu0 %vm422_vm2, %v5282_v12 }
  0x80   : > { %3997 = vmatmul.mubr.msk.f32.gmra.mxu1 %vm422_vm2, %v4934_v4  ;;  %4101 = vmatprep.mubr.msk.f32.mxu0 %vm422_vm2, %v6328_v55  ;;  %v6336_v55 = vld [vmem:[#allocation27_spill] sm:$0xff] }
  0x81   : > { %4051 = vmatprep.mubr.msk.f32.mxu1 %vm422_vm2, %v4653_v7  ;;  %v6330_v7 = vld [vmem:[#allocation14_spill] sm:$0xff] }
  0x83   : > { %4102 = vmatmul.mubr.msk.f32.vlgmr.msra.gmra.mxu0 %vm422_vm2, %v6329_v49  ;;  %v6337_v49 = vld [vmem:[#allocation30_spill] sm:$0xff] }
  0x84   : > { %4052 = vmatmul.mubr.msk.f32.vlgmr.msra.gmra.mxu1 %vm422_vm2, %v4681_v18  ;;  %4200 = vmatpush3.msk.msra.mxu0 %vm487_vm0, %v5039_v34  ;;  %v6331_v18 = vld [vmem:[#allocation16_spill] sm:$0xff]  ;;  %v6332_v34 = vld [vmem:[#allocation18_spill] sm:$0xff] }
  0x85   : > { %4150 = vmatpush3.msk.msra.mxu1 %vm487_vm0, %v5027_v36  ;;  %4054 = vmatprep.mubr.msk.f32.mxu1 %vm422_vm2, %v4700_v27  ;;  %v6333_v36 = vld [vmem:[#allocation20_spill] sm:$0xff] }
  0x86   : > { %4104 = vmatprep.mubr.msk.f32.mxu0 %vm422_vm2, %v6330_v7  ;;  %4249 = vmatprep.subr.msk.mxu1 %vm487_vm0, %v5299_v19 }
  0x87   : > { %4105 = vmatmul.mubr.msk.f32.gmra.mxu0 %vm422_vm2, %v6331_v18  ;;  %4299 = vmatprep.subr.msk.mxu0 %vm487_vm0, %v5308_v30 }
  0x88   : > { %4055 = vmatmul.mubr.msk.f32.gmra.mxu1 %vm422_vm2, %v4711_v31  ;;  %4107 = vmatprep.mubr.msk.f32.mxu0 %vm422_vm2, %v6332_v34 }
  0x89   : > { %4057 = vmatprep.mubr.msk.f32.mxu1 %vm422_vm2, %v4735_v40 }
  0x8b   : > { %4108 = vmatmul.mubr.msk.f32.gmra.mxu0 %vm422_vm2, %v6333_v36 }
  0x8c   : > { %4058 = vmatmul.mubr.msk.f32.gmra.mxu1 %vm422_vm2, %v4750_v46  ;;  %4110 = vmatprep.mubr.msk.f32.mxu0 %vm422_vm2, %v6334_v13  ;;  %v6338_v13 = vld [vmem:[#allocation32_spill] sm:$0xff] }
  0x8d   : > { %4060 = vmatprep.mubr.msk.f32.mxu1 %vm422_vm2, %v4782_v58 }
  0x8f   : > { %4111 = vmatmul.mubr.msk.f32.gmra.mxu0 %vm422_vm2, %v6335_v14 }
  0x90   : > { %4061 = vmatmul.mubr.msk.f32.gmra.mxu1 %vm422_vm2, %v4785_v59  ;;  %4113 = vmatprep.mubr.msk.f32.mxu0 %vm422_vm2, %v6336_v55  ;;  %v5425_v55 = vld [vmem:[%s4628_s24 + $0x190] sm:$0x3] }
  0x91   : > { %4063 = vmatprep.mubr.msk.f32.mxu1 %vm422_vm2, %v4825_v22 }
  0x93   : > { %4114 = vmatmul.mubr.msk.f32.gmra.mxu0 %vm422_vm2, %v6337_v49  ;;  %v5412_v49 = vld [vmem:[%s4628_s24 + $0x188] sm:$0xff] }
  0x94   : > { %4064 = vmatmul.mubr.msk.f32.gmra.mxu1 %vm422_vm2, %v4828_v23  ;;  %4116 = vmatprep.mubr.msk.f32.mxu0 %vm422_vm2, %v6338_v13  ;;  %v6339_v13 = vld [vmem:[#allocation8_spill] sm:$0xff] }
  0x95   : > { %4066 = vmatprep.mubr.msk.f32.mxu1 %vm422_vm2, %v4869_v63 }
  0x97   : > { %4117 = vmatmul.mubr.msk.f32.gmra.mxu0 %vm422_vm2, %v4974_v54  ;;  %v6340_v54 = vld [vmem:[#allocation9_spill] sm:$0xff] }
  0x98   : > { %4067 = vmatmul.mubr.msk.f32.gmra.mxu1 %vm422_vm2, %v4872_v8  ;;  %4119 = vmatprep.mubr.msk.f32.mxu0 %vm422_vm2, %v4983_v17  ;;  %v6341_v17 = vld [vmem:[#allocation11_spill] sm:$0xff] }
  0x99   : > { %4069 = vmatprep.mubr.msk.f32.mxu1 %vm422_vm2, %v4918_v43 }
  0x9b   : > { %4120 = vmatmul.mubr.msk.f32.gmra.mxu0 %vm422_vm2, %v4999_v37  ;;  %v6342_v37 = vld [vmem:[#allocation13_spill] sm:$0xff] }
  0x9c   : > { %4070 = vmatmul.mubr.msk.f32.gmra.mxu1 %vm422_vm2, %v4921_v42  ;;  %4122 = vmatprep.mubr.msk.f32.mxu0 %vm422_vm2, %v6339_v13  ;;  %v6343_v13 = vld [vmem:[#allocation15_spill] sm:$0xff] }
  0x9d   : > { %4072 = vmatprep.mubr.msk.f32.mxu1 %vm422_vm2, %v4647_v5 }
  0x9f   : > { %4123 = vmatmul.mubr.msk.f32.gmra.mxu0 %vm422_vm2, %v6340_v54  ;;  %v6344_v54 = vld [vmem:[#allocation17_spill] sm:$0xff] }
  0xa0   : > { %4073 = vmatmul.mubr.msk.f32.gmra.mxu1 %vm422_vm2, %v4650_v6  ;;  %4125 = vmatprep.mubr.msk.f32.mxu0 %vm422_vm2, %v6341_v17  ;;  %v6345_v17 = vld [vmem:[#allocation19_spill] sm:$0xff] }
  0xa1   : > { %4075 = vmatprep.mubr.msk.f32.mxu1 %vm422_vm2, %v4685_v20 }
  0xa3   : > { %4126 = vmatmul.mubr.msk.f32.gmra.mxu0 %vm422_vm2, %v6342_v37  ;;  %v6346_v37 = vld [vmem:[#allocation21_spill] sm:$0xff] }
  0xa4   : > { %4076 = vmatmul.mubr.msk.f32.gmra.mxu1 %vm422_vm2, %v4688_v21  ;;  %4128 = vmatprep.mubr.msk.f32.mxu0 %vm422_vm2, %v6343_v13  ;;  %v6347_v13 = vld [vmem:[#allocation23_spill] sm:$0xff] }
  0xa5   : > { %4078 = vmatprep.mubr.msk.f32.mxu1 %vm422_vm2, %v4715_v33 }
  0xa7   : > { %4129 = vmatmul.mubr.msk.f32.gmra.mxu0 %vm422_vm2, %v6344_v54  ;;  %v6348_v54 = vld [vmem:[#allocation26_spill] sm:$0xff] }
  0xa8   : > { %4079 = vmatmul.mubr.msk.f32.gmra.mxu1 %vm422_vm2, %v4729_v38  ;;  %4131 = vmatprep.mubr.msk.f32.mxu0 %vm422_vm2, %v6345_v17  ;;  %v6349_v17 = vld [vmem:[#allocation29_spill] sm:$0xff] }
  0xa9   : > { %4081 = vmatprep.mubr.msk.f32.mxu1 %vm422_vm2, %v4763_v51 }
  0xab   : > { %4132 = vmatmul.mubr.msk.f32.gmra.mxu0 %vm422_vm2, %v6346_v37  ;;  %v5409_v37 = vld [vmem:[%s4628_s24 + $0x180] sm:$0xff] }
  0xac   : > { %4082 = vmatmul.mubr.msk.f32.gmra.mxu1 %vm422_vm2, %v4766_v52  ;;  %4134 = vmatprep.mubr.msk.f32.mxu0 %vm422_vm2, %v6347_v13  ;;  %v6350_v13 = vld [vmem:[#allocation31_spill] sm:$0xff] }
  0xad   : > { %4084 = vmatprep.mubr.msk.f32.mxu1 %vm422_vm2, %v4800_v0 }
  0xaf   : > { %4135 = vmatmul.mubr.msk.f32.gmra.mxu0 %vm422_vm2, %v6348_v54  ;;  %v1685_v54 = vrot.slane %v5412_v49, 1 }
  0xb0   : > { %4085 = vmatmul.mubr.msk.f32.gmra.mxu1 %vm422_vm2, %v4803_v3  ;;  %4137 = vmatprep.mubr.msk.f32.mxu0 %vm422_vm2, %v6349_v17  ;;  %v1684_v17 = vrot.slane %v5409_v37, 1 }
  0xb1   : > { %4087 = vmatprep.mubr.msk.f32.mxu1 %vm422_vm2, %v4833_v24 }
  0xb3   : > { %4138 = vmatmul.mubr.msk.f32.gmra.mxu0 %vm422_vm2, %v6350_v13  ;;  %v5437_v13 = vsel %vm339_vm1, %v1684_v17, %v1685_v54  ;;  %v6363_v17 = vld [vmem:[#allocation50_spill] sm:$0xff] }
  0xb4   : > { %4088 = vmatmul.mubr.msk.f32.gmra.mxu1 %vm422_vm2, %v4836_v25  ;;  %4140 = vmatprep.mubr.msk.f32.mxu0 %vm422_vm2, %v4960_v61  ;;  %v1687_v61 = vrot.slane %v5425_v55, 1  ;;  %6351 = vst [vmem:[#allocation28_spill] sm:$0xff] %v5437_v13 }
  0xb5   : > { %4090 = vmatprep.mubr.msk.f32.mxu1 %vm422_vm2, %v4877_v9 }
  0xb7   : > { %4141 = vmatmul.mubr.msk.f32.gmra.mxu0 %vm422_vm2, %v4977_v62  ;;  %v5446_v62 = vsel %vm339_vm1, %v1685_v54, %v1687_v61 }
  0xb8   : > { %4091 = vmatmul.mubr.msk.f32.gmra.mxu1 %vm422_vm2, %v6325_v57  ;;  %4143 = vmatprep.mubr.msk.f32.mxu0 %vm422_vm2, %v4989_v48  ;;  %6352 = vst [vmem:[#allocation10_spill] sm:$0xff] %v5446_v62 }
  0xb9   : > { %4093 = vmatprep.mubr.msk.f32.mxu1 %vm422_vm2, %v4931_v56 }
  0xbb   : > { %4144 = vmatmul.mubr.msk.f32.gmra.mxu0 %vm422_vm2, %v5004_v32  ;;  %v5623_v32 = vld [vmem:[%s4628_s24 + $0x198] sm:$0xff] }
  0xbc   : > { %4094 = vmatmul.mubr.msk.f32.gmra.mxu1 %vm422_vm2, %v4934_v4  ;;  %4146 = vmatprep.mubr.msk.f32.mxu0 %vm422_vm2, %v5437_v13 }
  0xbd   : > { %4096 = vmatprep.mubr.msk.f32.mxu1 %vm422_vm2, %v5409_v37 }
  0xbf   : > { %4147 = vmatmul.mubr.msk.f32.gmra.mxu0 %vm422_vm2, %v5446_v62 }
  0xc0   : > { %4097 = vmatmul.mubr.msk.f32.gmra.mxu1 %vm422_vm2, %v5412_v49  ;;  %4201 = vmatprep.mubr.msk.f32.mxu0 %vm422_vm2, %v4700_v27  ;;  %v6353_v27 = vld [vmem:[#allocation40_spill] sm:$0xff] }
  0xc1   : > { %4151 = vmatprep.mubr.msk.f32.mxu1 %vm422_vm2, %v5022_v60 }
  0xc3   : > { %4202 = vmatmul.mubr.msk.f32.vlgmr.msra.gmra.mxu0 %vm422_vm2, %v4711_v31  ;;  %v6354_v31 = vld [vmem:[#allocation41_spill] sm:$0xff] }
  0xc4   : > { %4152 = vmatmul.mubr.msk.f32.vlgmr.msra.gmra.mxu1 %vm422_vm2, %v5033_v1  ;;  %4300 = vmatpush3.msk.msra.mxu0 %vm487_vm0, %v5308_v30 }
  0xc5   : > { %4250 = vmatpush3.msk.msra.mxu1 %vm487_vm0, %v5299_v19  ;;  %4154 = vmatprep.mubr.msk.f32.mxu1 %vm422_vm2, %v5046_v2  ;;  %v1955_v19 = vrot.slane %v5409_v37, 2 }
  0xc6   : > { %4204 = vmatprep.mubr.msk.f32.mxu0 %vm422_vm2, %v4735_v40  ;;  %v6355_v40 = vld [vmem:[#allocation42_spill] sm:$0xff] }
  0xc7   : > { %4205 = vmatmul.mubr.msk.f32.gmra.mxu0 %vm422_vm2, %v4750_v46  ;;  %v6356_v46 = vld [vmem:[#allocation43_spill] sm:$0xff] }
  0xc8   : > { %4155 = vmatmul.mubr.msk.f32.gmra.mxu1 %vm422_vm2, %v5063_v16  ;;  %4207 = vmatprep.mubr.msk.f32.mxu0 %vm422_vm2, %v4782_v58  ;;  %v6357_v58 = vld [vmem:[#allocation44_spill] sm:$0xff] }
  0xc9   : > { %4157 = vmatprep.mubr.msk.f32.mxu1 %vm422_vm2, %v5069_v11 }
  0xcb   : > { %4208 = vmatmul.mubr.msk.f32.gmra.mxu0 %vm422_vm2, %v4785_v59 }
  0xcc   : > { %4158 = vmatmul.mubr.msk.f32.gmra.mxu1 %vm422_vm2, %v5080_v53  ;;  %4210 = vmatprep.mubr.msk.f32.mxu0 %vm422_vm2, %v4825_v22  ;;  %v6359_v22 = vld [vmem:[#allocation46_spill] sm:$0xff] }
  0xcd   : > { %4160 = vmatprep.mubr.msk.f32.mxu1 %vm422_vm2, %v5086_v28 }
  0xcf   : > { %4211 = vmatmul.mubr.msk.f32.gmra.mxu0 %vm422_vm2, %v4828_v23  ;;  %v6360_v23 = vld [vmem:[#allocation47_spill] sm:$0xff] }
  0xd0   : > { %4161 = vmatmul.mubr.msk.f32.gmra.mxu1 %vm422_vm2, %v6353_v27  ;;  %4213 = vmatprep.mubr.msk.f32.mxu0 %vm422_vm2, %v4869_v63 }
  0xd1   : > { %4163 = vmatprep.mubr.msk.f32.mxu1 %vm422_vm2, %v5103_v15 }
  0xd3   : > { %4214 = vmatmul.mubr.msk.f32.gmra.mxu0 %vm422_vm2, %v4872_v8  ;;  %v6361_v8 = vld [vmem:[#allocation48_spill] sm:$0xff] }
  0xd4   : > { %4164 = vmatmul.mubr.msk.f32.gmra.mxu1 %vm422_vm2, %v6354_v31  ;;  %4216 = vmatprep.mubr.msk.f32.mxu0 %vm422_vm2, %v4918_v43  ;;  %v6362_v43 = vld [vmem:[#allocation49_spill] sm:$0xff] }
  0xd5   : > { %4166 = vmatprep.mubr.msk.f32.mxu1 %vm422_vm2, %v5120_v10 }
  0xd7   : > { %4217 = vmatmul.mubr.msk.f32.gmra.mxu0 %vm422_vm2, %v4921_v42 }
  0xd8   : > { %4167 = vmatmul.mubr.msk.f32.gmra.mxu1 %vm422_vm2, %v6355_v40  ;;  %4219 = vmatprep.mubr.msk.f32.mxu0 %vm422_vm2, %v4647_v5 }
  0xd9   : > { %4169 = vmatprep.mubr.msk.f32.mxu1 %vm422_vm2, %v5137_v29 }
  0xdb   : > { %4220 = vmatmul.mubr.msk.f32.gmra.mxu0 %vm422_vm2, %v4650_v6 }
  0xdc   : > { %4170 = vmatmul.mubr.msk.f32.gmra.mxu1 %vm422_vm2, %v6356_v46  ;;  %4222 = vmatprep.mubr.msk.f32.mxu0 %vm422_vm2, %v4685_v20  ;;  %v6358_v20 = vld [vmem:[#allocation45_spill] sm:$0xff] }
  0xdd   : > { %4172 = vmatprep.mubr.msk.f32.mxu1 %vm422_vm2, %v5154_v35 }
  0xdf   : > { %4223 = vmatmul.mubr.msk.f32.gmra.mxu0 %vm422_vm2, %v4688_v21 }
  0xe0   : > { %4173 = vmatmul.mubr.msk.f32.gmra.mxu1 %vm422_vm2, %v6357_v58  ;;  %4225 = vmatprep.mubr.msk.f32.mxu0 %vm422_vm2, %v4715_v33 }
  0xe1   : > { %4175 = vmatprep.mubr.msk.f32.mxu1 %vm422_vm2, %v5171_v26 }
  0xe3   : > { %v5526_v5 = vpop.f32.mrf.mxu0  ;;  %4226 = vmatmul.mubr.msk.f32.gmra.mxu0 %vm422_vm2, %v4729_v38 }
  0xe4   : > { %v5530_v6 = vpop.f32.mrf.mxu1  ;;  %4176 = vmatmul.mubr.msk.f32.gmra.mxu1 %vm422_vm2, %v6358_v20  ;;  %4228 = vmatprep.mubr.msk.f32.mxu0 %vm422_vm2, %v4763_v51 }
  0xe5   : > { %v5536_v21 = vpop.f32.mrf.mxu0  ;;  %4178 = vmatprep.mubr.msk.f32.mxu1 %vm422_vm2, %v5188_v44 }
  0xe6   : > { %v5540_v33 = vpop.f32.mrf.mxu1 }
  0xe7   : > { %v5542_v59 = vpop.f32.mrf.mxu0  ;;  %4229 = vmatmul.mubr.msk.f32.gmra.mxu0 %vm422_vm2, %v4766_v52 }
  0xe8   : > { %v5546_v38 = vpop.f32.mrf.mxu1  ;;  %4179 = vmatmul.mubr.msk.f32.gmra.mxu1 %vm422_vm2, %v6359_v22  ;;  %4231 = vmatprep.mubr.msk.f32.mxu0 %vm422_vm2, %v4800_v0 }
  0xe9   : > { %v5552_v51 = vpop.f32.mrf.mxu0  ;;  %4181 = vmatprep.mubr.msk.f32.mxu1 %vm422_vm2, %v6360_v23 }
  0xea   : > { %v5556_v42 = vpop.f32.mrf.mxu1 }
  0xeb   : > { %v5558_v63 = vpop.f32.mrf.mxu0  ;;  %4232 = vmatmul.mubr.msk.f32.gmra.mxu0 %vm422_vm2, %v4803_v3 }
  0xec   : > { %v5562_v52 = vpop.f32.mrf.mxu1  ;;  %4182 = vmatmul.mubr.msk.f32.gmra.mxu1 %vm422_vm2, %v6361_v8  ;;  %4234 = vmatprep.mubr.msk.f32.mxu0 %vm422_vm2, %v4833_v24 }
  0xed   : > { %v5568_v0 = vpop.f32.mrf.mxu0  ;;  %4184 = vmatprep.mubr.msk.f32.mxu1 %vm422_vm2, %v6362_v43 }
  0xee   : > { %v5572_v61 = vpop.f32.mrf.mxu1 }
  0xef   : > { %v5574_v54 = vpop.f32.mrf.mxu0  ;;  %4235 = vmatmul.mubr.msk.f32.gmra.mxu0 %vm422_vm2, %v4836_v25 }
  0xf0   : > { %v5578_v3 = vpop.f32.mrf.mxu1  ;;  %4185 = vmatmul.mubr.msk.f32.gmra.mxu1 %vm422_vm2, %v6363_v17  ;;  %4237 = vmatprep.mubr.msk.f32.mxu0 %vm422_vm2, %v4877_v9 }
  0xf1   : > { %v5584_v24 = vpop.f32.mrf.mxu0  ;;  %4187 = vmatprep.mubr.msk.f32.mxu1 %vm422_vm2, %v5239_v47 }
  0xf2   : > { %v5588_v60 = vpop.f32.mrf.mxu1 }
  0xf3   : > { %v5590_v1 = vpop.f32.mrf.mxu0  ;;  %4238 = vmatmul.mubr.msk.f32.gmra.mxu0 %vm422_vm2, %v6325_v57  ;;  %v1956_v57 = vrot.slane %v5412_v49, 2 }
  0xf4   : > { %v5594_v25 = vpop.f32.mrf.mxu1  ;;  %4188 = vmatmul.mubr.msk.f32.gmra.mxu1 %vm422_vm2, %v5250_v50  ;;  %4240 = vmatprep.mubr.msk.f32.mxu0 %vm422_vm2, %v4931_v56 }
  0xf5   : > { %6364 = vst [vmem:[#allocation12_spill] sm:$0xff] %v5594_v25  ;;  %v5600_v9 = vpop.f32.mrf.mxu0  ;;  %4190 = vmatprep.mubr.msk.f32.mxu1 %vm422_vm2, %v5256_v41  ;;  %v5642_v25 = vld [vmem:[%s4628_s24 + $0x1a0] sm:$0xff] }
  0xf6   : > { %v5605_v30 = vpop.f32.mrf.mxu1 }
  0xf7   : > { %6365 = vst [vmem:[#allocation14_spill] sm:$0xff] %v5605_v30  ;;  %v5608_v62 = vpop.f32.mrf.mxu0  ;;  %4241 = vmatmul.mubr.msk.f32.gmra.mxu0 %vm422_vm2, %v4934_v4  ;;  %v1958_v30 = vrot.slane %v5425_v55, 2  ;;  %v5629_v4 = vsel %vm1008_vm3, %v1955_v19, %v1956_v57 }
  0xf8   : > { %v5612_v13 = vpop.f32.mrf.mxu1  ;;  %4191 = vmatmul.mubr.msk.f32.gmra.mxu1 %vm422_vm2, %v5267_v45  ;;  %4243 = vmatprep.mubr.msk.f32.mxu0 %vm422_vm2, %v5409_v37  ;;  %6368 = vst [vmem:[#allocation20_spill] sm:$0xff] %v5629_v4 }
  0xf9   : > { %6366 = vst [vmem:[#allocation16_spill] sm:$0xff] %v5612_v13  ;;  %v5618_v56 = vpop.f32.mrf.mxu0  ;;  %4193 = vmatprep.mubr.msk.f32.mxu1 %vm422_vm2, %v5273_v39  ;;  %v5649_v19 = vsel %vm1008_vm3, %v1956_v57, %v1958_v30 }
  0xfa   : > { %v5626_v48 = vpop.f32.mrf.mxu1  ;;  %6370 = vst [vmem:[#allocation40_spill] sm:$0xff] %v5649_v19 }
  0xfb   : > { %6367 = vst [vmem:[#allocation18_spill] sm:$0xff] %v5626_v48  ;;  %v5631_v13 = vpop.f32.mrf.mxu0  ;;  %4244 = vmatmul.mubr.msk.f32.gmra.mxu0 %vm422_vm2, %v5412_v49 }
  0xfc   : > { %v5635_v37 = vpop.f32.mrf.mxu1  ;;  %4194 = vmatmul.mubr.msk.f32.gmra.mxu1 %vm422_vm2, %v5282_v12  ;;  %4246 = vmatprep.mubr.msk.f32.mxu0 %vm422_vm2, %v5623_v32 }
  0xfd   : > { %6369 = vst [vmem:[#allocation25_spill] sm:$0xff] %v5635_v37  ;;  %v5644_v55 = vpop.f32.mrf.mxu0  ;;  %4196 = vmatprep.mubr.msk.f32.mxu1 %vm422_vm2, %v5629_v4 }
  0xfe   : > { %v5651_v48 = vpop.f32.mrf.mxu1 }
  0xff   : > { %6371 = vst [vmem:[#allocation41_spill] sm:$0xff] %v5651_v48  ;;  %v5653_v49 = vpop.f32.mrf.mxu0  ;;  %4247 = vmatmul.mubr.msk.f32.gmra.mxu0 %vm422_vm2, %v5642_v25 }
 0x100   : > { %v5657_v37 = vpop.f32.mrf.mxu1  ;;  %4197 = vmatmul.mubr.msk.f32.gmra.mxu1 %vm422_vm2, %v5649_v19  ;;  %4301 = vmatprep.mubr.msk.f32.mxu0 %vm422_vm2, %v5046_v2 }
 0x101   : > { %6372 = vst [vmem:[#allocation42_spill] sm:$0xff] %v5657_v37  ;;  %v5663_v12 = vpop.f32.mrf.mxu0  ;;  %4251 = vmatprep.mubr.msk.f32.mxu1 %vm422_vm2, %v6330_v7 }
 0x102   : > { %v5667_v30 = vpop.f32.mrf.mxu1 }
 0x103   : > { %6373 = vst [vmem:[#allocation43_spill] sm:$0xff] %v5667_v30  ;;  %v4003_v57 = vpop.f32.mrf.mxu0  ;;  %4302 = vmatmul.mubr.msk.f32.vlgmr.msra.gmra.mxu0 %vm422_vm2, %v5063_v16 }
 0x104   : > { %v3953_v48 = vpop.f32.mrf.mxu1  ;;  %4252 = vmatmul.mubr.msk.f32.vlgmr.msra.gmra.mxu1 %vm422_vm2, %v6331_v18  ;;  %4304 = vmatprep.mubr.msk.f32.mxu0 %vm422_vm2, %v5069_v11 }
 0x105   : > { %v855_v2 = vadd.f32 %v3953_v48, %v5526_v5  ;;  %v1224_v37 = vpop.f32.mrf.mxu0  ;;  %4254 = vmatprep.mubr.msk.f32.mxu1 %vm422_vm2, %v6332_v34  ;;  %v6374_v34 = vld [vmem:[#allocation22_spill] sm:$0xff] }
 0x106   : > { %v849_v7 = vpop.f32.mrf.mxu1 }
 0x107   : > { %v5678_v19 = vadd.f32 %v4003_v57, %v855_v2  ;;  %v850_v30 = vadd.f32 %v849_v7, %v5536_v21  ;;  %v4006_v4 = vpop.f32.mrf.mxu0  ;;  %4305 = vmatmul.mubr.msk.f32.gmra.mxu0 %vm422_vm2, %v5080_v53  ;;  %v6376_v7 = vld [vmem:[#allocation30_spill] sm:$0xff] }
 0x108   : > { %v3956_v16 = vpop.f32.mrf.mxu1  ;;  %4255 = vmatmul.mubr.msk.f32.gmra.mxu1 %vm422_vm2, %v6333_v36  ;;  %4307 = vmatprep.mubr.msk.f32.mxu0 %vm422_vm2, %v5086_v28 }
 0x109   : > { %v5687_v48 = vadd.f32 %v1224_v37, %v850_v30  ;;  %v865_v11 = vadd.f32 %v3956_v16, %v5542_v59  ;;  %v1234_v18 = vpop.f32.mrf.mxu0  ;;  %4257 = vmatprep.mubr.msk.f32.mxu1 %vm422_vm2, %v6374_v34 }
 0x10a   : > { %v859_v5 = vpop.f32.mrf.mxu1 }
 0x10b   : > { %v5692_v21 = vadd.f32 %v4006_v4, %v865_v11  ;;  %v860_v53 = vadd.f32 %v859_v5, %v5552_v51  ;;  %v4009_v57 = vpop.f32.mrf.mxu0  ;;  %4308 = vmatmul.mubr.msk.f32.gmra.mxu0 %vm422_vm2, %v6353_v27  ;;  %v6375_v4 = vld [vmem:[#allocation27_spill] sm:$0xff]  ;;  %v6377_v11 = vld [vmem:[#allocation32_spill] sm:$0xff] }
 0x10c   : > { %v3959_v36 = vpop.f32.mrf.mxu1  ;;  %4258 = vmatmul.mubr.msk.f32.gmra.mxu1 %vm422_vm2, %v6335_v14  ;;  %4310 = vmatprep.mubr.msk.f32.mxu0 %vm422_vm2, %v5103_v15 }
 0x10d   : > { %v5701_v28 = vadd.f32 %v1234_v18, %v860_v53  ;;  %v875_v59 = vadd.f32 %v3959_v36, %v5558_v63  ;;  %v1244_v37 = vpop.f32.mrf.mxu0  ;;  %4260 = vmatprep.mubr.msk.f32.mxu1 %vm422_vm2, %v6375_v4  ;;  %v6378_v53 = vld [vmem:[#allocation34_spill] sm:$0xff]  ;;  %v6379_v36 = vld [vmem:[#allocation36_spill] sm:$0xff] }
 0x10e   : > { %v869_v51 = vpop.f32.mrf.mxu1 }
 0x10f   : > { %v5706_v30 = vadd.f32 %v4009_v57, %v875_v59  ;;  %v870_v27 = vadd.f32 %v869_v51, %v5568_v0  ;;  %v4012_v2 = vpop.f32.mrf.mxu0  ;;  %4311 = vmatmul.mubr.msk.f32.gmra.mxu0 %vm422_vm2, %v6354_v31  ;;  %v6380_v51 = vld [vmem:[#allocation38_spill] sm:$0xff] }
 0x110   : > { %v3962_v14 = vpop.f32.mrf.mxu1  ;;  %4261 = vmatmul.mubr.msk.f32.gmra.mxu1 %vm422_vm2, %v6376_v7  ;;  %4313 = vmatprep.mubr.msk.f32.mxu0 %vm422_vm2, %v5120_v10 }
 0x111   : > { %v5715_v15 = vadd.f32 %v1244_v37, %v870_v27  ;;  %v885_v63 = vadd.f32 %v3962_v14, %v5574_v54  ;;  %v1254_v16 = vpop.f32.mrf.mxu0  ;;  %4263 = vmatprep.mubr.msk.f32.mxu1 %vm422_vm2, %v6377_v11 }
 0x112   : > { %v879_v0 = vpop.f32.mrf.mxu1 }
 0x113   : > { %v5720_v18 = vadd.f32 %v4012_v2, %v885_v63  ;;  %v880_v31 = vadd.f32 %v879_v0, %v5584_v24  ;;  %v4015_v34 = vpop.f32.mrf.mxu0  ;;  %4314 = vmatmul.mubr.msk.f32.gmra.mxu0 %vm422_vm2, %v6355_v40  ;;  %v6381_v2 = vld [vmem:[#allocation8_spill] sm:$0xff]  ;;  %v6383_v0 = vld [vmem:[#allocation11_spill] sm:$0xff] }
 0x114   : > { %v3965_v5 = vpop.f32.mrf.mxu1  ;;  %4264 = vmatmul.mubr.msk.f32.gmra.mxu1 %vm422_vm2, %v6378_v53  ;;  %4316 = vmatprep.mubr.msk.f32.mxu0 %vm422_vm2, %v5137_v29  ;;  %v6384_v53 = vld [vmem:[#allocation13_spill] sm:$0xff] }
 0x115   : > { %v5729_v10 = vadd.f32 %v1254_v16, %v880_v31  ;;  %v895_v54 = vadd.f32 %v3965_v5, %v5590_v1  ;;  %v1264_v57 = vpop.f32.mrf.mxu0  ;;  %4266 = vmatprep.mubr.msk.f32.mxu1 %vm422_vm2, %v6379_v36  ;;  %v6382_v16 = vld [vmem:[#allocation9_spill] sm:$0xff] }
 0x116   : > { %v889_v24 = vpop.f32.mrf.mxu1 }
 0x117   : > { %v5734_v59 = vadd.f32 %v4015_v34, %v895_v54  ;;  %v890_v40 = vadd.f32 %v889_v24, %v5600_v9  ;;  %v4018_v37 = vpop.f32.mrf.mxu0  ;;  %4317 = vmatmul.mubr.msk.f32.gmra.mxu0 %vm422_vm2, %v6356_v46 }
 0x118   : > { %v3968_v4 = vpop.f32.mrf.mxu1  ;;  %4267 = vmatmul.mubr.msk.f32.gmra.mxu1 %vm422_vm2, %v6380_v51  ;;  %4319 = vmatprep.mubr.msk.f32.mxu0 %vm422_vm2, %v5154_v35  ;;  %v6387_v51 = vld [vmem:[#allocation19_spill] sm:$0xff] }
 0x119   : > { %v5743_v29 = vadd.f32 %v1264_v57, %v890_v40  ;;  %v905_v1 = vadd.f32 %v3968_v4, %v5608_v62  ;;  %v1274_v27 = vpop.f32.mrf.mxu0  ;;  %4269 = vmatprep.mubr.msk.f32.mxu1 %vm422_vm2, %v6381_v2  ;;  %v6385_v57 = vld [vmem:[#allocation15_spill] sm:$0xff] }
 0x11a   : > { %v899_v9 = vpop.f32.mrf.mxu1 }
 0x11b   : > { %v5748_v14 = vadd.f32 %v4018_v37, %v905_v1  ;;  %v900_v46 = vadd.f32 %v899_v9, %v5618_v56  ;;  %v4021_v7 = vpop.f32.mrf.mxu0  ;;  %4320 = vmatmul.mubr.msk.f32.gmra.mxu0 %vm422_vm2, %v6357_v58  ;;  %v6386_v37 = vld [vmem:[#allocation17_spill] sm:$0xff] }
 0x11c   : > { %v3971_v63 = vpop.f32.mrf.mxu1  ;;  %4270 = vmatmul.mubr.msk.f32.gmra.mxu1 %vm422_vm2, %v6382_v16  ;;  %4322 = vmatprep.mubr.msk.f32.mxu0 %vm422_vm2, %v5171_v26  ;;  %v6388_v9 = vld [vmem:[#allocation21_spill] sm:$0xff] }
 0x11d   : > { %v5757_v62 = vadd.f32 %v1274_v27, %v900_v46  ;;  %v915_v35 = vadd.f32 %v3971_v63, %v5631_v13  ;;  %v1284_v11 = vpop.f32.mrf.mxu0  ;;  %4272 = vmatprep.mubr.msk.f32.mxu1 %vm422_vm2, %v6383_v0 }
 0x11e   : > { %v909_v56 = vpop.f32.mrf.mxu1 }
 0x11f   : > { %v5762_v31 = vadd.f32 %v4021_v7, %v915_v35  ;;  %v910_v58 = vadd.f32 %v909_v56, %v5644_v55  ;;  %v4024_v34 = vpop.f32.mrf.mxu0  ;;  %4323 = vmatmul.mubr.msk.f32.gmra.mxu0 %vm422_vm2, %v6358_v20  ;;  %v6389_v7 = vld [vmem:[#allocation23_spill] sm:$0xff]  ;;  %v6391_v56 = vld [vmem:[#allocation29_spill] sm:$0xff] }
 0x120   : > { %v3974_v5 = vpop.f32.mrf.mxu1  ;;  %4273 = vmatmul.mubr.msk.f32.gmra.mxu1 %vm422_vm2, %v6384_v53  ;;  %4325 = vmatprep.mubr.msk.f32.mxu0 %vm422_vm2, %v5188_v44  ;;  %v6392_v53 = vld [vmem:[#allocation31_spill] sm:$0xff] }
 0x121   : > { %v5771_v26 = vadd.f32 %v1284_v11, %v910_v58  ;;  %v925_v13 = vadd.f32 %v3974_v5, %v5653_v49  ;;  %v1294_v54 = vpop.f32.mrf.mxu0  ;;  %4275 = vmatprep.mubr.msk.f32.mxu1 %vm422_vm2, %v6385_v57  ;;  %v6390_v11 = vld [vmem:[#allocation26_spill] sm:$0xff] }
 0x122   : > { %v919_v55 = vpop.f32.mrf.mxu1 }
 0x123   : > { %v5776_v36 = vadd.f32 %v4024_v34, %v925_v13  ;;  %v920_v20 = vadd.f32 %v919_v55, %v5663_v12  ;;  %v4027_v24 = vpop.f32.mrf.mxu0  ;;  %4326 = vmatmul.mubr.msk.f32.gmra.mxu0 %vm422_vm2, %v6359_v22 }
 0x124   : > { %v3977_v40 = vpop.f32.mrf.mxu1  ;;  %4276 = vmatmul.mubr.msk.f32.gmra.mxu1 %vm422_vm2, %v6386_v37  ;;  %4328 = vmatprep.mubr.msk.f32.mxu0 %vm422_vm2, %v6360_v23  ;;  %v6395_v37 = vld [vmem:[#allocation12_spill] sm:$0xff] }
 0x125   : > { %v5785_v44 = vadd.f32 %v1294_v54, %v920_v20  ;;  %v935_v49 = vadd.f32 %v3977_v40, %v5530_v6  ;;  %v1304_v4 = vpop.f32.mrf.mxu0  ;;  %4278 = vmatprep.mubr.msk.f32.mxu1 %vm422_vm2, %v6387_v51  ;;  %v6393_v54 = vld [vmem:[#allocation33_spill] sm:$0xff]  ;;  %v2496_v51 = vrot.slane %v5642_v25, 1 }
 0x126   : > { %v929_v12 = vpop.f32.mrf.mxu1 }
 0x127   : > { %v5790_v1 = vadd.f32 %v4027_v24, %v935_v49  ;;  %v930_v22 = vadd.f32 %v929_v12, %v5540_v33  ;;  %v4030_v27 = vpop.f32.mrf.mxu0  ;;  %4329 = vmatmul.mubr.msk.f32.gmra.mxu0 %vm422_vm2, %v6361_v8  ;;  %v2767_v24 = vrot.slane %v5642_v25, 2  ;;  %v6401_v25 = vld [vmem:[#allocation16_spill] sm:$0xff] }
 0x128   : > { %v3980_v2 = vpop.f32.mrf.mxu1  ;;  %4279 = vmatmul.mubr.msk.f32.gmra.mxu1 %vm422_vm2, %v6388_v9  ;;  %4331 = vmatprep.mubr.msk.f32.mxu0 %vm422_vm2, %v6362_v43 }
 0x129   : > { %v5799_v6 = vadd.f32 %v1304_v4, %v930_v22  ;;  %v945_v23 = vadd.f32 %v3980_v2, %v5546_v38  ;;  %v1314_v46 = vpop.f32.mrf.mxu0  ;;  %4281 = vmatprep.mubr.msk.f32.mxu1 %vm422_vm2, %v6389_v7  ;;  %v6396_v4 = vld [vmem:[#allocation37_spill] sm:$0xff]  ;;  %v289_v22 = vld [vmem:[%s4628_s24 + $0x1a8] sm:$0x3]  ;;  %s3599_s24 = sshll.u32 %s4503_s18, 4 }
 0x12a   : > { %v939_v33 = vpop.f32.mrf.mxu1  ;;  %v6399_v7 = vld [vmem:[#allocation39_spill] sm:$0xff]  ;;  %s3103_s14 = scalar_lea.vmem [#allocation2], %s3599_s24 }
 0x12b   : > { %v5804_v63 = vadd.f32 %v4030_v27, %v945_v23  ;;  %v940_v8 = vadd.f32 %v939_v33, %v5556_v42  ;;  %v4033_v16 = vpop.f32.mrf.mxu0  ;;  %4332 = vmatmul.mubr.msk.f32.gmra.mxu0 %vm422_vm2, %v6363_v17  ;;  %v6398_v23 = vld [vmem:[#allocation24_spill] sm:$0xff] }
 0x12c   : > { %v3983_v35 = vpop.f32.mrf.mxu1  ;;  %4282 = vmatmul.mubr.msk.f32.gmra.mxu1 %vm422_vm2, %v6390_v11  ;;  %4334 = vmatprep.mubr.msk.f32.mxu0 %vm422_vm2, %v5239_v47  ;;  %v6400_v33 = vld [vmem:[#allocation20_spill] sm:$0xff] }
 0x12d   : > { %v5813_v38 = vadd.f32 %v1314_v46, %v940_v8  ;;  %v955_v43 = vadd.f32 %v3983_v35, %v5562_v52  ;;  %v1324_v0 = vpop.f32.mrf.mxu0  ;;  %4284 = vmatprep.mubr.msk.f32.mxu1 %vm422_vm2, %v6391_v56  ;;  %v6402_v11 = vld [vmem:[#allocation28_spill] sm:$0xff] }
 0x12e   : > { %v949_v42 = vpop.f32.mrf.mxu1 }
 0x12f   : > { %v5818_v58 = vadd.f32 %v4033_v16, %v955_v43  ;;  %v950_v17 = vadd.f32 %v949_v42, %v5572_v61  ;;  %v4036_v34 = vpop.f32.mrf.mxu0  ;;  %4335 = vmatmul.mubr.msk.f32.gmra.mxu0 %vm422_vm2, %v5250_v50  ;;  %v2498_v43 = vrot.slane %v289_v22, 1 }
 0x130   : > { %v3986_v5 = vpop.f32.mrf.mxu1  ;;  %4285 = vmatmul.mubr.msk.f32.gmra.mxu1 %vm422_vm2, %v6392_v53  ;;  %4337 = vmatprep.mubr.msk.f32.mxu0 %vm422_vm2, %v5256_v41  ;;  %v6394_v41 = vld [vmem:[#allocation35_spill] sm:$0xff] }
 0x131   : > { %v5827_v47 = vadd.f32 %v1324_v0, %v950_v17  ;;  %v965_v52 = vadd.f32 %v3986_v5, %v5578_v3  ;;  %v1334_v13 = vpop.f32.mrf.mxu0  ;;  %4287 = vmatprep.mubr.msk.f32.mxu1 %vm422_vm2, %v6393_v54  ;;  %v2766_v3 = vrot.slane %v5623_v32, 2  ;;  %v6405_v54 = vld [vmem:[#allocation10_spill] sm:$0xff] }
 0x132   : > { %v959_v61 = vpop.f32.mrf.mxu1 }
 0x133   : > { %v5832_v57 = vadd.f32 %v4036_v34, %v965_v52  ;;  %v960_v50 = vadd.f32 %v959_v61, %v5588_v60  ;;  %v4039_v55 = vpop.f32.mrf.mxu0  ;;  %4338 = vmatmul.mubr.msk.f32.gmra.mxu0 %vm422_vm2, %v5267_v45  ;;  %v2495_v45 = vrot.slane %v5623_v32, 1  ;;  %v2769_v32 = vrot.slane %v289_v22, 2  ;;  %v6403_v34 = vld [vmem:[#allocation18_spill] sm:$0xff]  ;;  %v6404_v52 = vld [vmem:[#allocation40_spill] sm:$0xff] }
 0x134   : > { %v3989_v20 = vpop.f32.mrf.mxu1  ;;  %4288 = vmatmul.mubr.msk.f32.gmra.mxu1 %vm422_vm2, %v6394_v41  ;;  %4340 = vmatprep.mubr.msk.f32.mxu0 %vm422_vm2, %v5273_v39  ;;  %v6397_v39 = vld [vmem:[#allocation14_spill] sm:$0xff]  ;;  %v2768_v0 = vsel %vm1008_vm3, %v2766_v3, %v2767_v24  ;;  %v2499_v3 = vsel %vm339_vm1, %v2496_v51, %v2498_v43 }
 0x135   : > { %v5843_v40 = vadd.f32 %v1334_v13, %v960_v50  ;;  %v975_v49 = vadd.f32 %v3989_v20, %v6395_v37  ;;  %v1344_v60 = vpop.f32.mrf.mxu0  ;;  %4290 = vmatprep.mubr.msk.f32.mxu1 %vm422_vm2, %v6396_v4  ;;  %v2497_v42 = vsel %vm339_vm1, %v2495_v45, %v2496_v51  ;;  %v2770_v61 = vsel %vm1008_vm3, %v2767_v24, %v2769_v32  ;;  %v6408_v22 = vld [vmem:[#allocation42_spill] sm:$0xff]  ;;  %v6409_v51 = vld [vmem:[#allocation43_spill] sm:$0xff] }
 0x136   : > { %v969_v12 = vpop.f32.mrf.mxu1 }
 0x137   : > { %v5851_v27 = vadd.f32 %v4039_v55, %v975_v49  ;;  %v970_v2 = vadd.f32 %v969_v12, %v6397_v39  ;;  %v4042_v9 = vpop.f32.mrf.mxu0  ;;  %4341 = vmatmul.mubr.msk.f32.gmra.mxu0 %vm422_vm2, %v6398_v23  ;;  %v6406_v55 = vld [vmem:[#allocation25_spill] sm:$0xff] }
 0x138   : > { %v3992_v46 = vpop.f32.mrf.mxu1  ;;  %4291 = vmatmul.mubr.msk.f32.gmra.mxu1 %vm422_vm2, %v6399_v7  ;;  %4343 = vmatprep.mubr.msk.f32.mxu0 %vm422_vm2, %v6400_v33 }
 0x139   : > { %v5860_v8 = vadd.f32 %v1344_v60, %v970_v2  ;;  %v985_v16 = vadd.f32 %v3992_v46, %v6401_v25  ;;  %v1354_v35 = vpop.f32.mrf.mxu0  ;;  %4293 = vmatprep.mubr.msk.f32.mxu1 %vm422_vm2, %v6402_v11  ;;  %v6407_v60 = vld [vmem:[#allocation41_spill] sm:$0xff] }
 0x13a   : > { %v979_v56 = vpop.f32.mrf.mxu1 }
 0x13b   : > { %v5867_v17 = vadd.f32 %v4042_v9, %v985_v16  ;;  %v980_v5 = vadd.f32 %v979_v56, %v6403_v34  ;;  %v4045_v53 = vpop.f32.mrf.mxu0  ;;  %4344 = vmatmul.mubr.msk.f32.gmra.mxu0 %vm422_vm2, %v6404_v52 }
 0x13c   : > { %v3995_v13 = vpop.f32.mrf.mxu1  ;;  %4294 = vmatmul.mubr.msk.f32.gmra.mxu1 %vm422_vm2, %v6405_v54  ;;  %4346 = vmatprep.mubr.msk.f32.mxu0 %vm422_vm2, %v2768_v0 }
 0x13d   : > { %v5876_v50 = vadd.f32 %v1354_v35, %v980_v5  ;;  %v995_v20 = vadd.f32 %v3995_v13, %v6406_v55  ;;  %v1364_v41 = vpop.f32.mrf.mxu0  ;;  %4296 = vmatprep.mubr.msk.f32.mxu1 %vm422_vm2, %v2497_v42 }
 0x13e   : > { %v989_v37 = vpop.f32.mrf.mxu1 }
 0x13f   : > { %v5881_v49 = vadd.f32 %v4045_v53, %v995_v20  ;;  %v990_v4 = vadd.f32 %v989_v37, %v6407_v60  ;;  %v4048_v45 = vpop.f32.mrf.mxu0  ;;  %4347 = vmatmul.mubr.msk.f32.gmra.mxu0 %vm422_vm2, %v2770_v61 }
 0x140   : > { %v3998_v12 = vpop.f32.mrf.mxu1  ;;  %4297 = vmatmul.mubr.msk.f32.gmra.mxu1 %vm422_vm2, %v2499_v3 }
 0x141   : > { %v5886_v24 = vadd.f32 %v1364_v41, %v990_v4  ;;  %v1005_v39 = vadd.f32 %v3998_v12, %v6408_v22  ;;  %v1374_v2 = vpop.f32.mrf.mxu0 }
 0x142   : > { %v999_v9 = vpop.f32.mrf.mxu1 }
 0x143   : > { %v5889_v23 = vadd.f32 %v4048_v45, %v1005_v39  ;;  %v1000_v46 = vadd.f32 %v999_v9, %v6409_v51  ;;  %v4103_v7 = vpop.f32.mrf.mxu0 }
 0x144   : > { %v4053_v33 = vpop.f32.mrf.mxu1 }
 0x145   : > { %v5892_v32 = vadd.f32 %v1374_v2, %v1000_v46  ;;  %v1652_v25 = vadd.f32 %v4053_v33, %v5678_v19  ;;  %v1764_v16 = vpop.f32.mrf.mxu0 }
 0x146   : > { %v1492_v35 = vpop.f32.mrf.mxu1 }
 0x147   : > { %v5895_v11 = vadd.f32 %v4103_v7, %v1652_v25  ;;  %v1651_v43 = vadd.f32 %v1492_v35, %v5687_v48  ;;  %v4106_v0 = vpop.f32.mrf.mxu0 }
 0x148   : > { %v4056_v56 = vpop.f32.mrf.mxu1 }
 0x149   : > { %v5898_v42 = vadd.f32 %v1764_v16, %v1651_v43  ;;  %v1654_v34 = vadd.f32 %v4056_v56, %v5692_v21  ;;  %v1774_v5 = vpop.f32.mrf.mxu0 }
 0x14a   : > { %v1502_v53 = vpop.f32.mrf.mxu1 }
 0x14b   : > { %v5901_v52 = vadd.f32 %v4106_v0, %v1654_v34  ;;  %v1653_v13 = vadd.f32 %v1502_v53, %v5701_v28  ;;  %v4109_v54 = vpop.f32.mrf.mxu0 }
 0x14c   : > { %v4059_v19 = vpop.f32.mrf.mxu1 }
 0x14d   : > { %v5904_v61 = vadd.f32 %v1774_v5, %v1653_v13  ;;  %v1656_v55 = vadd.f32 %v4059_v19, %v5706_v30  ;;  %v1784_v20 = vpop.f32.mrf.mxu0 }
 0x14e   : > { %v1512_v48 = vpop.f32.mrf.mxu1 }
 0x14f   : > { %v5907_v41 = vadd.f32 %v4109_v54, %v1656_v55  ;;  %v1655_v3 = vadd.f32 %v1512_v48, %v5715_v15  ;;  %v4112_v37 = vpop.f32.mrf.mxu0 }
 0x150   : > { %v4062_v21 = vpop.f32.mrf.mxu1 }
 0x151   : > { %v5910_v60 = vadd.f32 %v1784_v20, %v1655_v3  ;;  %v1658_v4 = vadd.f32 %v4062_v21, %v5720_v18  ;;  %v1794_v45 = vpop.f32.mrf.mxu0 }
 0x152   : > { %v1522_v28 = vpop.f32.mrf.mxu1 }
 0x153   : > { %v5913_v12 = vadd.f32 %v4112_v37, %v1658_v4  ;;  %v1657_v22 = vadd.f32 %v1522_v28, %v5729_v10  ;;  %v4115_v39 = vpop.f32.mrf.mxu0 }
 0x154   : > { %v4065_v30 = vpop.f32.mrf.mxu1 }
 0x155   : > { %v5916_v2 = vadd.f32 %v1794_v45, %v1657_v22  ;;  %v1660_v9 = vadd.f32 %v4065_v30, %v5734_v59  ;;  %v1804_v51 = vpop.f32.mrf.mxu0 }
 0x156   : > { %v1532_v15 = vpop.f32.mrf.mxu1 }
 0x157   : > { %v5919_v46 = vadd.f32 %v4115_v39, %v1660_v9  ;;  %v1659_v7 = vadd.f32 %v1532_v15, %v5743_v29  ;;  %v4118_v33 = vpop.f32.mrf.mxu0 }
 0x158   : > { %v4068_v18 = vpop.f32.mrf.mxu1 }
 0x159   : > { %v5922_v25 = vadd.f32 %v1804_v51, %v1659_v7  ;;  %v1662_v16 = vadd.f32 %v4068_v18, %v5748_v14  ;;  %v1814_v35 = vpop.f32.mrf.mxu0 }
 0x15a   : > { %v1542_v10 = vpop.f32.mrf.mxu1 }
 0x15b   : > { %v5925_v43 = vadd.f32 %v4118_v33, %v1662_v16  ;;  %v1661_v0 = vadd.f32 %v1542_v10, %v5757_v62  ;;  %v4121_v56 = vpop.f32.mrf.mxu0 }
 0x15c   : > { %v4071_v59 = vpop.f32.mrf.mxu1 }
 0x15d   : > { %v5928_v34 = vadd.f32 %v1814_v35, %v1661_v0  ;;  %v1664_v5 = vadd.f32 %v4071_v59, %v5762_v31  ;;  %v1824_v53 = vpop.f32.mrf.mxu0 }
 0x15e   : > { %v1552_v29 = vpop.f32.mrf.mxu1 }
 0x15f   : > { %v5931_v13 = vadd.f32 %v4121_v56, %v1664_v5  ;;  %v1663_v54 = vadd.f32 %v1552_v29, %v5771_v26  ;;  %v4124_v19 = vpop.f32.mrf.mxu0 }
 0x160   : > { %v4074_v14 = vpop.f32.mrf.mxu1 }
 0x161   : > { %v5934_v55 = vadd.f32 %v1824_v53, %v1663_v54  ;;  %v1666_v20 = vadd.f32 %v4074_v14, %v5776_v36  ;;  %v1834_v48 = vpop.f32.mrf.mxu0 }
 0x162   : > { %v1562_v62 = vpop.f32.mrf.mxu1 }
 0x163   : > { %v5937_v3 = vadd.f32 %v4124_v19, %v1666_v20  ;;  %v1665_v37 = vadd.f32 %v1562_v62, %v5785_v44  ;;  %v4127_v21 = vpop.f32.mrf.mxu0 }
 0x164   : > { %v4077_v31 = vpop.f32.mrf.mxu1 }
 0x165   : > { %v5940_v4 = vadd.f32 %v1834_v48, %v1665_v37  ;;  %v1668_v45 = vadd.f32 %v4077_v31, %v5790_v1  ;;  %v1844_v28 = vpop.f32.mrf.mxu0 }
 0x166   : > { %v1572_v26 = vpop.f32.mrf.mxu1 }
 0x167   : > { %v5943_v22 = vadd.f32 %v4127_v21, %v1668_v45  ;;  %v1667_v39 = vadd.f32 %v1572_v26, %v5799_v6  ;;  %v4130_v30 = vpop.f32.mrf.mxu0 }
 0x168   : > { %v4080_v36 = vpop.f32.mrf.mxu1 }
 0x169   : > { %v5946_v9 = vadd.f32 %v1844_v28, %v1667_v39  ;;  %v1670_v51 = vadd.f32 %v4080_v36, %v5804_v63  ;;  %v1854_v15 = vpop.f32.mrf.mxu0 }
 0x16a   : > { %v1582_v44 = vpop.f32.mrf.mxu1 }
 0x16b   : > { %v5949_v7 = vadd.f32 %v4130_v30, %v1670_v51  ;;  %v1669_v33 = vadd.f32 %v1582_v44, %v5813_v38  ;;  %v4133_v18 = vpop.f32.mrf.mxu0 }
 0x16c   : > { %v4083_v1 = vpop.f32.mrf.mxu1 }
 0x16d   : > { %v5952_v16 = vadd.f32 %v1854_v15, %v1669_v33  ;;  %v1672_v35 = vadd.f32 %v4083_v1, %v5818_v58  ;;  %v1864_v10 = vpop.f32.mrf.mxu0 }
 0x16e   : > { %v1592_v6 = vpop.f32.mrf.mxu1 }
 0x16f   : > { %v5955_v0 = vadd.f32 %v4133_v18, %v1672_v35  ;;  %v1671_v56 = vadd.f32 %v1592_v6, %v5827_v47  ;;  %v4136_v59 = vpop.f32.mrf.mxu0 }
 0x170   : > { %v4086_v63 = vpop.f32.mrf.mxu1 }
 0x171   : > { %v5958_v5 = vadd.f32 %v1864_v10, %v1671_v56  ;;  %v1674_v53 = vadd.f32 %v4086_v63, %v5832_v57  ;;  %v1874_v29 = vpop.f32.mrf.mxu0 }
 0x172   : > { %v1602_v38 = vpop.f32.mrf.mxu1 }
 0x173   : > { %v5961_v54 = vadd.f32 %v4136_v59, %v1674_v53  ;;  %v1673_v19 = vadd.f32 %v1602_v38, %v5843_v40  ;;  %v4139_v14 = vpop.f32.mrf.mxu0 }
 0x174   : > { %v4089_v58 = vpop.f32.mrf.mxu1 }
 0x175   : > { %v5964_v20 = vadd.f32 %v1874_v29, %v1673_v19  ;;  %v1676_v48 = vadd.f32 %v4089_v58, %v5851_v27  ;;  %v1884_v62 = vpop.f32.mrf.mxu0 }
 0x176   : > { %v1612_v47 = vpop.f32.mrf.mxu1 }
 0x177   : > { %v5967_v37 = vadd.f32 %v4139_v14, %v1676_v48  ;;  %v1675_v21 = vadd.f32 %v1612_v47, %v5860_v8  ;;  %v4142_v31 = vpop.f32.mrf.mxu0 }
 0x178   : > { %v4092_v57 = vpop.f32.mrf.mxu1 }
 0x179   : > { %v5970_v45 = vadd.f32 %v1884_v62, %v1675_v21  ;;  %v1678_v28 = vadd.f32 %v4092_v57, %v5867_v17  ;;  %v1894_v26 = vpop.f32.mrf.mxu0 }
 0x17a   : > { %v1622_v40 = vpop.f32.mrf.mxu1 }
 0x17b   : > { %v5973_v39 = vadd.f32 %v4142_v31, %v1678_v28  ;;  %v1677_v30 = vadd.f32 %v1622_v40, %v5876_v50  ;;  %v4145_v36 = vpop.f32.mrf.mxu0 }
 0x17c   : > { %v4095_v27 = vpop.f32.mrf.mxu1 }
 0x17d   : > { %v5976_v51 = vadd.f32 %v1894_v26, %v1677_v30  ;;  %v1680_v15 = vadd.f32 %v4095_v27, %v5881_v49  ;;  %v1904_v44 = vpop.f32.mrf.mxu0 }
 0x17e   : > { %v1632_v8 = vpop.f32.mrf.mxu1 }
 0x17f   : > { %v5979_v33 = vadd.f32 %v4145_v36, %v1680_v15  ;;  %v1679_v18 = vadd.f32 %v1632_v8, %v5886_v24  ;;  %v4148_v1 = vpop.f32.mrf.mxu0 }
 0x180   : > { %v4098_v17 = vpop.f32.mrf.mxu1 }
 0x181   : > { %v5982_v35 = vadd.f32 %v1904_v44, %v1679_v18  ;;  %v1682_v10 = vadd.f32 %v4098_v17, %v5889_v23  ;;  %v1914_v6 = vpop.f32.mrf.mxu0 }
 0x182   : > { %v1642_v50 = vpop.f32.mrf.mxu1 }
 0x183   : > { %v5985_v56 = vadd.f32 %v4148_v1, %v1682_v10  ;;  %v1681_v59 = vadd.f32 %v1642_v50, %v5892_v32  ;;  %v4203_v63 = vpop.f32.mrf.mxu0 }
 0x184   : > { %v4153_v49 = vpop.f32.mrf.mxu1 }
 0x185   : > { %v5988_v53 = vadd.f32 %v1914_v6, %v1681_v59  ;;  %v2195_v29 = vadd.f32 %v4153_v49, %v5895_v11  ;;  %v5991_v38 = vpop.f32.mrf.mxu0 }
 0x186   : > { %v5993_v24 = vpop.f32.mrf.mxu1 }
 0x187   : > { %v5995_v19 = vadd.f32 %v4203_v63, %v2195_v29  ;;  %v4206_v14 = vpop.f32.mrf.mxu0 }
 0x188   : > { %v4156_v23 = vpop.f32.mrf.mxu1 }
 0x189   : > { %v2197_v58 = vadd.f32 %v4156_v23, %v5901_v52  ;;  %v2313_v48 = vpop.f32.mrf.mxu0 }
 0x18a   : > { %v2045_v62 = vpop.f32.mrf.mxu1 }
 0x18b   : > { %v5998_v47 = vadd.f32 %v4206_v14, %v2197_v58  ;;  %v2196_v32 = vadd.f32 %v2045_v62, %v5904_v61  ;;  %v4209_v21 = vpop.f32.mrf.mxu0 }
 0x18c   : > { %v4159_v31 = vpop.f32.mrf.mxu1 }
 0x18d   : > { %v6001_v57 = vadd.f32 %v2313_v48, %v2196_v32  ;;  %v2199_v11 = vadd.f32 %v4159_v31, %v5907_v41  ;;  %v2323_v28 = vpop.f32.mrf.mxu0 }
 0x18e   : > { %v2055_v26 = vpop.f32.mrf.mxu1 }
 0x18f   : > { %v6004_v40 = vadd.f32 %v4209_v21, %v2199_v11  ;;  %v2198_v30 = vadd.f32 %v2055_v26, %v5910_v60  ;;  %v4212_v36 = vpop.f32.mrf.mxu0 }
 0x190   : > { %v4162_v52 = vpop.f32.mrf.mxu1 }
 0x191   : > { %v6007_v27 = vadd.f32 %v2323_v28, %v2198_v30  ;;  %v2201_v15 = vadd.f32 %v4162_v52, %v5913_v12  ;;  %v2333_v44 = vpop.f32.mrf.mxu0 }
 0x192   : > { %v2065_v61 = vpop.f32.mrf.mxu1 }
 0x193   : > { %v6010_v8 = vadd.f32 %v4212_v36, %v2201_v15  ;;  %v2200_v18 = vadd.f32 %v2065_v61, %v5916_v2  ;;  %v4215_v1 = vpop.f32.mrf.mxu0 }
 0x194   : > { %v4165_v41 = vpop.f32.mrf.mxu1 }
 0x195   : > { %v6013_v17 = vadd.f32 %v2333_v44, %v2200_v18  ;;  %v2203_v10 = vadd.f32 %v4165_v41, %v5919_v46  ;;  %v2343_v6 = vpop.f32.mrf.mxu0 }
 0x196   : > { %v2075_v60 = vpop.f32.mrf.mxu1 }
 0x197   : > { %v6016_v50 = vadd.f32 %v4215_v1, %v2203_v10  ;;  %v2202_v59 = vadd.f32 %v2075_v60, %v5922_v25  ;;  %v4218_v63 = vpop.f32.mrf.mxu0 }
 0x198   : > { %v4168_v12 = vpop.f32.mrf.mxu1 }
 0x199   : > { %v6019_v49 = vadd.f32 %v2343_v6, %v2202_v59  ;;  %v2205_v29 = vadd.f32 %v4168_v12, %v5925_v43  ;;  %v2353_v14 = vpop.f32.mrf.mxu0 }
 0x19a   : > { %v2085_v2 = vpop.f32.mrf.mxu1 }
 0x19b   : > { %v6022_v23 = vadd.f32 %v4218_v63, %v2205_v29  ;;  %v2204_v58 = vadd.f32 %v2085_v2, %v5928_v34  ;;  %v4221_v48 = vpop.f32.mrf.mxu0 }
 0x19c   : > { %v4171_v46 = vpop.f32.mrf.mxu1 }
 0x19d   : > { %v6025_v62 = vadd.f32 %v2353_v14, %v2204_v58  ;;  %v2207_v32 = vadd.f32 %v4171_v46, %v5931_v13  ;;  %v2363_v21 = vpop.f32.mrf.mxu0 }
 0x19e   : > { %v2095_v25 = vpop.f32.mrf.mxu1 }
 0x19f   : > { %v6028_v31 = vadd.f32 %v4221_v48, %v2207_v32  ;;  %v2206_v11 = vadd.f32 %v2095_v25, %v5934_v55  ;;  %v4224_v28 = vpop.f32.mrf.mxu0 }
 0x1a0   : > { %v4174_v43 = vpop.f32.mrf.mxu1 }
 0x1a1   : > { %v6031_v26 = vadd.f32 %v2363_v21, %v2206_v11  ;;  %v2209_v30 = vadd.f32 %v4174_v43, %v5937_v3  ;;  %v2373_v36 = vpop.f32.mrf.mxu0 }
 0x1a2   : > { %v2105_v34 = vpop.f32.mrf.mxu1 }
 0x1a3   : > { %v6034_v52 = vadd.f32 %v4224_v28, %v2209_v30  ;;  %v2208_v15 = vadd.f32 %v2105_v34, %v5940_v4  ;;  %v4227_v44 = vpop.f32.mrf.mxu0 }
 0x1a4   : > { %v4177_v13 = vpop.f32.mrf.mxu1 }
 0x1a5   : > { %v6037_v61 = vadd.f32 %v2373_v36, %v2208_v15  ;;  %v2211_v18 = vadd.f32 %v4177_v13, %v5943_v22  ;;  %v6040_v1 = vpop.f32.mrf.mxu0 }
 0x1a6   : > { %v6042_v55 = vpop.f32.mrf.mxu1 }
 0x1a7   : > { %v6044_v41 = vadd.f32 %v4227_v44, %v2211_v18  ;;  %v4230_v10 = vpop.f32.mrf.mxu0 }
 0x1a8   : > { %v4180_v3 = vpop.f32.mrf.mxu1 }
 0x1a9   : > { %v2213_v6 = vadd.f32 %v4180_v3, %v5949_v7  ;;  %v2393_v60 = vpop.f32.mrf.mxu0 }
 0x1aa   : > { %v2125_v59 = vpop.f32.mrf.mxu1 }
 0x1ab   : > { %v6047_v63 = vadd.f32 %v4230_v10, %v2213_v6  ;;  %v2212_v4 = vadd.f32 %v2125_v59, %v5952_v16  ;;  %v4233_v12 = vpop.f32.mrf.mxu0 }
 0x1ac   : > { %v4183_v29 = vpop.f32.mrf.mxu1 }
 0x1ad   : > { %v6050_v14 = vadd.f32 %v2393_v60, %v2212_v4  ;;  %v2215_v22 = vadd.f32 %v4183_v29, %v5955_v0  ;;  %v2403_v2 = vpop.f32.mrf.mxu0 }
 0x1ae   : > { %v2135_v58 = vpop.f32.mrf.mxu1 }
 0x1af   : > { %v6053_v48 = vadd.f32 %v4233_v12, %v2215_v22  ;;  %v2214_v46 = vadd.f32 %v2135_v58, %v5958_v5  ;;  %v4236_v32 = vpop.f32.mrf.mxu0 }
 0x1b0   : > { %v4186_v7 = vpop.f32.mrf.mxu1 }
 0x1b1   : > { %v6056_v21 = vadd.f32 %v2403_v2, %v2214_v46  ;;  %v2217_v25 = vadd.f32 %v4186_v7, %v5961_v54  ;;  %v2413_v11 = vpop.f32.mrf.mxu0 }
 0x1b2   : > { %v2145_v16 = vpop.f32.mrf.mxu1 }
 0x1b3   : > { %v6059_v28 = vadd.f32 %v4236_v32, %v2217_v25  ;;  %v2216_v43 = vadd.f32 %v2145_v16, %v5964_v20  ;;  %v4239_v30 = vpop.f32.mrf.mxu0  ;;  %v2194_v32 = vadd.f32 %v5993_v24, %v5898_v42 }
 0x1b4   : > { %v4189_v0 = vpop.f32.mrf.mxu1 }
 0x1b5   : > { %v6062_v36 = vadd.f32 %v2413_v11, %v2216_v43  ;;  %v2219_v34 = vadd.f32 %v4189_v0, %v5967_v37  ;;  %v2423_v15 = vpop.f32.mrf.mxu0  ;;  %v2462_v0 = vadd.f32 %v5991_v38, %v2194_v32 }
 0x1b6   : > { %v2155_v5 = vpop.f32.mrf.mxu1 }
 0x1b7   : > { %v6065_v44 = vadd.f32 %v4239_v30, %v2219_v34  ;;  %v2218_v13 = vadd.f32 %v2155_v5, %v5970_v45  ;;  %v4242_v18 = vpop.f32.mrf.mxu0 }
 0x1b8   : > { %v4192_v54 = vpop.f32.mrf.mxu1 }
 0x1b9   : > { %v6068_v10 = vadd.f32 %v2423_v15, %v2218_v13  ;;  %v2221_v3 = vadd.f32 %v4192_v54, %v5973_v39  ;;  %v2433_v6 = vpop.f32.mrf.mxu0 }
 0x1ba   : > { %v2165_v20 = vpop.f32.mrf.mxu1 }
 0x1bb   : > { %v6071_v60 = vadd.f32 %v4242_v18, %v2221_v3  ;;  %v2220_v59 = vadd.f32 %v2165_v20, %v5976_v51  ;;  %v4245_v4 = vpop.f32.mrf.mxu0 }
 0x1bc   : > { %v4195_v37 = vpop.f32.mrf.mxu1 }
 0x1bd   : > { %v6074_v12 = vadd.f32 %v2433_v6, %v2220_v59  ;;  %v2223_v29 = vadd.f32 %v4195_v37, %v5979_v33  ;;  %v2443_v22 = vpop.f32.mrf.mxu0 }
 0x1be   : > { %v2175_v45 = vpop.f32.mrf.mxu1 }
 0x1bf   : > { %v6077_v2 = vadd.f32 %v4245_v4, %v2223_v29  ;;  %v2222_v58 = vadd.f32 %v2175_v45, %v5982_v35  ;;  %v4248_v46 = vpop.f32.mrf.mxu0 }
 0x1c0   : > { %v4198_v39 = vpop.f32.mrf.mxu1 }
 0x1c1   : > { %v6082_v7 = vadd.f32 %v2443_v22, %v2222_v58  ;;  %v2225_v51 = vadd.f32 %v4198_v39, %v5985_v56  ;;  %v2453_v25 = vpop.f32.mrf.mxu0 }
 0x1c2   : > { %v2185_v11 = vpop.f32.mrf.mxu1 }
 0x1c3   : > { %v6085_v16 = vadd.f32 %v4248_v46, %v2225_v51  ;;  %v2224_v33 = vadd.f32 %v2185_v11, %v5988_v53  ;;  %v4303_v43 = vpop.f32.mrf.mxu0 }
 0x1c4   : > { %v4253_v30 = vpop.f32.mrf.mxu1 }
 0x1c5   : > { %v6089_v35 = vadd.f32 %v2453_v25, %v2224_v33  ;;  %v2846_v34 = vpop.f32.mrf.mxu0  ;;  %v2735_v13 = vadd.f32 %v4253_v30, %v5995_v19 }
 0x1c6   : > { %v2575_v15 = vpop.f32.mrf.mxu1 }
 0x1c7   : > { %v2734_v5 = vadd.f32 %v2575_v15, %v2462_v0  ;;  %v4306_v42 = vpop.f32.mrf.mxu0  ;;  %v3006_v53 = vadd.f32 %v4303_v43, %v2735_v13 }
 0x1c8   : > { %v4256_v24 = vpop.f32.mrf.mxu1 }
 0x1c9   : > { %v2856_v56 = vpop.f32.mrf.mxu0  ;;  %v3005_v18 = vadd.f32 %v2846_v34, %v2734_v5  ;;  %v2737_v29 = vadd.f32 %v4256_v24, %v5998_v47 }
 0x1ca   : > { %v2585_v54 = vpop.f32.mrf.mxu1 }
 0x1cb   : > { %3037 = vxpose.xlu0.b32.start [1/16] (narrow) %v3005_v18, 8  ;;  %v4309_v3 = vpop.f32.mrf.mxu0  ;;  %v2736_v20 = vadd.f32 %v2585_v54, %v6001_v57  ;;  %v3008_v39 = vadd.f32 %v4306_v42, %v2737_v29 }
 0x1cc   : > { %v4259_v6 = vpop.f32.mrf.mxu1 }
 0x1cd   : > { %v2866_v59 = vpop.f32.mrf.mxu0  ;;  %v3007_v22 = vadd.f32 %v2856_v56, %v2736_v20  ;;  %v2739_v33 = vadd.f32 %v4259_v6, %v6004_v40  ;;  %v2210_v40 = vadd.f32 %v6042_v55, %v5946_v9 }
 0x1ce   : > { %v2595_v38 = vpop.f32.mrf.mxu1 }
 0x1cf   : > { %3038 = vxpose.xlu0.b32.cont [2/16] (narrow) %v3006_v53, 8  ;;  %v4312_v4 = vpop.f32.mrf.mxu0  ;;  %v2738_v32 = vadd.f32 %v2595_v38, %v6007_v27  ;;  %v3010_v15 = vadd.f32 %v4309_v3, %v2739_v33 }
 0x1d0   : > { %v4262_v37 = vpop.f32.mrf.mxu1 }
 0x1d1   : > { %v2876_v45 = vpop.f32.mrf.mxu0  ;;  %v3009_v43 = vadd.f32 %v2866_v59, %v2738_v32  ;;  %v2741_v56 = vadd.f32 %v4262_v37, %v6010_v8 }
 0x1d2   : > { %v2605_v58 = vpop.f32.mrf.mxu1 }
 0x1d3   : > { %3039 = vxpose.xlu0.b32.cont [3/16] (narrow) %v3007_v22, 8  ;;  %v4315_v19 = vpop.f32.mrf.mxu0  ;;  %v2740_v5 = vadd.f32 %v2605_v58, %v6013_v17  ;;  %v2478_v17 = vadd.f32 %v6040_v1, %v2210_v40  ;;  %v3012_v20 = vadd.f32 %v4312_v4, %v2741_v56 }
 0x1d4   : > { %v4265_v46 = vpop.f32.mrf.mxu1 }
 0x1d5   : > { %v2886_v51 = vpop.f32.mrf.mxu0  ;;  %v3011_v18 = vadd.f32 %v2876_v45, %v2740_v5  ;;  %v2743_v9 = vadd.f32 %v4265_v46, %v6016_v50 }
 0x1d6   : > { %v2615_v25 = vpop.f32.mrf.mxu1 }
 0x1d7   : > { %3040 = vxpose.xlu0.b32.cont [4/16] (narrow) %v3008_v39, 8  ;;  %v4318_v57 = vpop.f32.mrf.mxu0  ;;  %v2742_v59 = vadd.f32 %v2615_v25, %v6019_v49  ;;  %v3014_v32 = vadd.f32 %v4315_v19, %v2743_v9 }
 0x1d8   : > { %v4268_v11 = vpop.f32.mrf.mxu1 }
 0x1d9   : > { %v2896_v30 = vpop.f32.mrf.mxu0  ;;  %v3013_v55 = vadd.f32 %v2886_v51, %v2742_v59  ;;  %v2745_v50 = vadd.f32 %v4268_v11, %v6022_v23 }
 0x1da   : > { %v2625_v0 = vpop.f32.mrf.mxu1 }
 0x1db   : > { %3041 = vxpose.xlu0.b32.cont [5/16] (narrow) %v3009_v43, 8  ;;  %v6096_v47 = vpop.f32.mrf.mxu0  ;;  %v2744_v1 = vadd.f32 %v2625_v0, %v6025_v62  ;;  %v3016_v19 = vadd.f32 %v4318_v57, %v2745_v50 }
 0x1dc   : > { %v4271_v34 = vpop.f32.mrf.mxu1 }
 0x1dd   : > { %v2906_v42 = vpop.f32.mrf.mxu0  ;;  %v3015_v46 = vadd.f32 %v2896_v30, %v2744_v1  ;;  %v2747_v23 = vadd.f32 %v4271_v34, %v6028_v31 }
 0x1de   : > { %v2635_v24 = vpop.f32.mrf.mxu1 }
 0x1df   : > { %3042 = vxpose.xlu0.b32.cont [6/16] (narrow) %v3010_v15, 8  ;;  %v6099_v27 = vpop.f32.mrf.mxu0  ;;  %v2746_v62 = vadd.f32 %v2635_v24, %v6031_v26  ;;  %v3018_v57 = vadd.f32 %v6096_v47, %v2747_v23 }
 0x1e0   : > { %v6101_v13 = vpop.f32.mrf.mxu1 }
 0x1e1   : > { %v2916_v54 = vpop.f32.mrf.mxu0  ;;  %v3017_v11 = vadd.f32 %v2906_v42, %v2746_v62  ;;  %v2749_v31 = vadd.f32 %v6101_v13, %v6034_v52 }
 0x1e2   : > { %v2645_v6 = vpop.f32.mrf.mxu1 }
 0x1e3   : > { %3043 = vxpose.xlu0.b32.cont [7/16] (narrow) %v3011_v18, 8  ;;  %v4327_v3 = vpop.f32.mrf.mxu0  ;;  %v2748_v26 = vadd.f32 %v2645_v6, %v6037_v61  ;;  %v3020_v61 = vadd.f32 %v6099_v27, %v2749_v31 }
 0x1e4   : > { %v4277_v53 = vpop.f32.mrf.mxu1 }
 0x1e5   : > { %v2926_v22 = vpop.f32.mrf.mxu0  ;;  %v2751_v8 = vadd.f32 %v4277_v53, %v6044_v41 }
 0x1e6   : > { %v2655_v38 = vpop.f32.mrf.mxu1 }
 0x1e7   : > { %v2750_v29 = vadd.f32 %v2655_v38, %v2478_v17  ;;  %3044 = vxpose.xlu0.b32.cont [8/16] (narrow) %v3012_v20, 8  ;;  %v4330_v39 = vpop.f32.mrf.mxu0  ;;  %v3022_v4 = vadd.f32 %v4327_v3, %v2751_v8 }
 0x1e8   : > { %v4280_v58 = vpop.f32.mrf.mxu1 }
 0x1e9   : > { %v3021_v37 = vadd.f32 %v2926_v22, %v2750_v29  ;;  %v2936_v33 = vpop.f32.mrf.mxu0  ;;  %v2753_v41 = vadd.f32 %v4280_v58, %v6047_v63 }
 0x1ea   : > { %v2665_v45 = vpop.f32.mrf.mxu1 }
 0x1eb   : > { %3045 = vxpose.xlu0.b32.cont [9/16] (narrow) %v3013_v55, 8  ;;  %3069 = vxpose.xlu1.b32.start [1/16] (narrow) %v3021_v37, 8  ;;  %v2752_v49 = vadd.f32 %v2665_v45, %v6050_v14  ;;  %v4333_v15 = vpop.f32.mrf.mxu0  ;;  %v3024_v0 = vadd.f32 %v4330_v39, %v2753_v41 }
 0x1ec   : > { %v4283_v25 = vpop.f32.mrf.mxu1 }
 0x1ed   : > { %v3023_v51 = vadd.f32 %v2936_v33, %v2752_v49  ;;  %v2946_v40 = vpop.f32.mrf.mxu0  ;;  %v2755_v63 = vadd.f32 %v4283_v25, %v6053_v48  ;;  %v3019_v48 = vadd.f32 %v2916_v54, %v2748_v26 }
 0x1ee   : > { %v2675_v43 = vpop.f32.mrf.mxu1 }
 0x1ef   : > { %3046 = vxpose.xlu0.b32.cont [10/16] (narrow) %v3014_v32, 8  ;;  %3070 = vxpose.xlu1.b32.cont [2/16] (narrow) %v3022_v4, 8  ;;  %v2754_v14 = vadd.f32 %v2675_v43, %v6056_v21  ;;  %v4336_v18 = vpop.f32.mrf.mxu0  ;;  %v3026_v24 = vadd.f32 %v4333_v15, %v2755_v63 }
 0x1f0   : > { %v4286_v5 = vpop.f32.mrf.mxu1 }
 0x1f1   : > { %v3025_v30 = vadd.f32 %v2946_v40, %v2754_v14  ;;  %v2956_v3 = vpop.f32.mrf.mxu0  ;;  %v2757_v34 = vadd.f32 %v4286_v5, %v6059_v28 }
 0x1f2   : > { %v2685_v56 = vpop.f32.mrf.mxu1 }
 0x1f3   : > { %3047 = vxpose.xlu0.b32.cont [11/16] (narrow) %v3015_v46, 8  ;;  %3071 = vxpose.xlu1.b32.cont [3/16] (narrow) %v3023_v51, 8  ;;  %v2756_v21 = vadd.f32 %v2685_v56, %v6062_v36  ;;  %v4339_v20 = vpop.f32.mrf.mxu0  ;;  %v3028_v47 = vadd.f32 %v4336_v18, %v2757_v34 }
 0x1f4   : > { %v4289_v53 = vpop.f32.mrf.mxu1 }
 0x1f5   : > { %v3027_v42 = vadd.f32 %v2956_v3, %v2756_v21  ;;  %v2966_v59 = vpop.f32.mrf.mxu0  ;;  %v2759_v38 = vadd.f32 %v4289_v53, %v6065_v44 }
 0x1f6   : > { %v2695_v17 = vpop.f32.mrf.mxu1 }
 0x1f7   : > { %3048 = vxpose.xlu0.b32.cont [12/16] (narrow) %v3016_v19, 8  ;;  %3072 = vxpose.xlu1.b32.cont [4/16] (narrow) %v3024_v0, 8  ;;  %v2758_v36 = vadd.f32 %v2695_v17, %v6068_v10  ;;  %v4342_v54 = vpop.f32.mrf.mxu0  ;;  %v3030_v28 = vadd.f32 %v4339_v20, %v2759_v38 }
 0x1f8   : > { %v4292_v6 = vpop.f32.mrf.mxu1 }
 0x1f9   : > { %v3029_v52 = vadd.f32 %v2966_v59, %v2758_v36  ;;  %v2976_v58 = vpop.f32.mrf.mxu0  ;;  %v2761_v27 = vadd.f32 %v4292_v6, %v6071_v60 }
 0x1fa   : > { %v2705_v13 = vpop.f32.mrf.mxu1 }
 0x1fb   : > { %3049 = vxpose.xlu0.b32.cont [13/16] (narrow) %v3017_v11, 8  ;;  %3073 = vxpose.xlu1.b32.cont [5/16] (narrow) %v3025_v30, 8  ;;  %v2760_v29 = vadd.f32 %v2705_v13, %v6074_v12  ;;  %v4345_v55 = vpop.f32.mrf.mxu0  ;;  %v3032_v8 = vadd.f32 %v4342_v54, %v2761_v27 }
 0x1fc   : > { %v4295_v22 = vpop.f32.mrf.mxu1 }
 0x1fd   : > { %v3031_v9 = vadd.f32 %v2976_v58, %v2760_v29  ;;  %v2986_v45 = vpop.f32.mrf.mxu0  ;;  %v2763_v39 = vadd.f32 %v4295_v22, %v6077_v2 }
 0x1fe   : > { %v2715_v10 = vpop.f32.mrf.mxu1 }
 0x1ff   : > { %3050 = vxpose.xlu0.b32.cont [14/16] (narrow) %v3018_v57, 8  ;;  %3074 = vxpose.xlu1.b32.cont [6/16] (narrow) %v3026_v24, 8  ;;  %v2762_v37 = vadd.f32 %v2715_v10, %v6082_v7  ;;  %v4348_v1 = vpop.f32.mrf.mxu0  ;;  %v3034_v4 = vadd.f32 %v4345_v55, %v2763_v39 }
 0x200   : > { %v4298_v44 = vpop.f32.mrf.mxu1 }
 0x201   : > { %v3033_v32 = vadd.f32 %v2986_v45, %v2762_v37  ;;  %v2996_v49 = vpop.f32.mrf.mxu0  ;;  %v2765_v25 = vadd.f32 %v4298_v44, %v6085_v16 }
 0x202   : > { %v2725_v12 = vpop.f32.mrf.mxu1 }
 0x203   : > { %3075 = vxpose.xlu1.b32.cont [7/16] (narrow) %v3027_v42, 8  ;;  %3051 = vxpose.xlu0.b32.cont [15/16] (narrow) %v3019_v48, 8  ;;  %v2764_v60 = vadd.f32 %v2725_v12, %v6089_v35  ;;  %v3036_v7 = vadd.f32 %v4348_v1, %v2765_v25 }
 0x205   : > { %v3035_v33 = vadd.f32 %v2996_v49, %v2764_v60 }
 0x207   : > { %3076 = vxpose.xlu1.b32.cont [8/16] (narrow) %v3028_v47, 8  ;;  %3052 = vxpose.xlu0.b32.end [16/16] (narrow) %v3020_v61, 8 }
 0x20b   : > { %3077 = vxpose.xlu1.b32.cont [9/16] (narrow) %v3029_v52, 8 }
 0x20f   : > { %3078 = vxpose.xlu1.b32.cont [10/16] (narrow) %v3030_v28, 8 }
 0x213   : > { %3079 = vxpose.xlu1.b32.cont [11/16] (narrow) %v3031_v9, 8 }
 0x217   : > { %3080 = vxpose.xlu1.b32.cont [12/16] (narrow) %v3032_v8, 8 }
 0x21b   : > { %3081 = vxpose.xlu1.b32.cont [13/16] (narrow) %v3033_v32, 8 }
 0x21f   : > { %3082 = vxpose.xlu1.b32.cont [14/16] (narrow) %v3034_v4, 8 }
 0x223   : > { %3083 = vxpose.xlu1.b32.cont [15/16] (narrow) %v3035_v33, 8 }
 0x227   : > { %3084 = vxpose.xlu1.b32.end [16/16] (narrow) %v3036_v7, 8 }
 0x247   : > { %v3053_v50 = vpop.trf.xlu0 }
 0x248   : > { %3104 = vst [vmem:[%s3103_s14] sm:$0xff] %v3053_v50 }
 0x267   : > { %v3085_v2 = vpop.trf.xlu1 }
 0x268   : > { %3105 = vst [vmem:[%s3103_s14 + $0x8] sm:$0xff] %v3085_v2 }
 0x269 PF: > { %p3106_p0 = scmp.eq.s32.totalorder %s4507_s19, 1  ;;  %p3107_p1 = scmp.eq.s32.totalorder %s4503_s18, 0 }
 0x26b   : > { %p3108_p2 = pnand %p3107_p1, %p3106_p0 }
 0x26d   : > { %3111 = sbr.rel (%p3108_p2) target bundleno = 950 (0x3b6), region = 44 }
 0x272   : > { %v3112_v35 = vld [vmem:[#allocation2] sm:$0xff]  ;;  %v3113_v46 = vld [vmem:[#allocation2 + $0x8] sm:$0xff]  ;;  %v3119_v16 = vld [vmem:[#allocation2 + $0x10] sm:$0xff]  ;;  %vm3148_vm4 = vcmask 7168  }
 0x273   : > { %v3114_v41 = vadd.f32 %v3113_v46, %v3112_v35  ;;  %v3120_v51 = vld [vmem:[#allocation2 + $0x18] sm:$0xff]  ;;  %v3144_v31 = vld [vmem:[%s6196_s2] sm:$0xff] }
 0x274   : > { %v3121_v43 = vadd.f32 %v3120_v51, %v3119_v16  ;;  %v3150_v42 = vld [vmem:[%s6197_s3] sm:$0xff] }
 0x275   : > { %3115 = vadd.xlane.f32.xlu0 %v3114_v41 }
 0x279   : > { %3122 = vadd.xlane.f32.xlu0 %v3121_v43 }
 0x2fe   : > { %v3116_v15 = vpop.xlane.xlu0 %3115 }
 0x302   : > { %v3123_v19 = vpop.xlane.xlu0 %3122 }
 0x303   : > { %v3124_v62 = vadd.f32 %v3123_v19, %v3116_v15 }
 0x305   : > { %v3126_v0 = vmul.f32 0.001953125, %v3124_v62 }
 0x307   : > { %v3127_v14 = vsub.f32 %v3112_v35, %v3126_v0  ;;  %v3128_v5 = vsub.f32 %v3113_v46, %v3126_v0  ;;  %v3135_v40 = vsub.f32 %v3119_v16, %v3126_v0  ;;  %v3136_v23 = vsub.f32 %v3120_v51, %v3126_v0 }
 0x309   : > { %v3129_v11 = vmul.f32 %v3127_v14, %v3127_v14  ;;  %v3130_v63 = vmul.f32 %v3128_v5, %v3128_v5  ;;  %v3137_v56 = vmul.f32 %v3135_v40, %v3135_v40  ;;  %v3138_v18 = vmul.f32 %v3136_v23, %v3136_v23 }
 0x30b   : > { %v3131_v30 = vadd.f32 %v3130_v63, %v3129_v11  ;;  %v3139_v57 = vadd.f32 %v3138_v18, %v3137_v56 }
 0x30d   : > { %3132 = vadd.xlane.f32.xlu1 %v3131_v30 }
 0x311   : > { %3140 = vadd.xlane.f32.xlu1 %v3139_v57 }
 0x396   : > { %v3133_v26 = vpop.xlane.xlu1 %3132 }
 0x39a   : > { %v3141_v24 = vpop.xlane.xlu1 %3140 }
 0x39b   : > { %v3142_v21 = vadd.f32 %v3141_v24, %v3133_v26 }
 0x39d   : > { %v3143_v53 = vmul.f32 0.001953125, %v3142_v21 }
 0x39f   : > { %v3145_v3 = vadd.f32 1e-05, %v3143_v53 }
 0x3a1   : > { %4424 = vrsqrt.f32 %v3145_v3 }
 0x3ae   : > { %v4425_v48 = vpop.eup %4424 }
 0x3af   : > { %v3147_v34 = vmul.f32 %v4425_v48, %v3144_v31 }
 0x3b1   : > { %3149 = vst.msk [vmem:[#allocation3] sm:$0xff] %vm3148_vm4, %v3147_v34  ;;  %v3151_v17 = vmul.f32 %v3147_v34, %v3126_v0 }
 0x3b3   : > { %v3152_v20 = vsub.f32 %v3150_v42, %v3151_v17 }
 0x3b5   : > { %3153 = vst.msk [vmem:[#allocation4] sm:$0xff] %vm3148_vm4, %v3152_v20 }
 0x3b6 PF: > { %p3591_p3 = scmp.ne.s32.totalorder %s4507_s19, 1 }
 0x3b7   : > { %s3600_s9 = sshll.u32 (!%p3591_p3), %s4503_s18, 4 }
 0x3b8   : > { %3156 = sbr.rel (%p3591_p3) target bundleno = 1093 (0x445), region = 48  ;;  %s3159_s10 = scalar_lea.vmem (!%p3591_p3), [#allocation2], %s3600_s9 }
 0x3bd   : > { %v3162_v61 = vld [vmem:[#allocation3] sm:$0xff]  ;;  %v4521_v47 = vmov 0   ;;  %v3170_v36 = vld [vmem:[#allocation4] sm:$0xff] }
 0x3be   : > { %4426 = vset.pattern.permute.xlu0 %v4521_v47  ;;  %v3160_v59 = vld [vmem:[%s3159_s10] sm:$0xff]  ;;  %v3161_v38 = vld [vmem:[%s3159_s10 + $0x8] sm:$0xff] }
 0x3bf   : > { %3165 = vperm.xlu0 %4426, %v3162_v61  }
 0x3c3   : > { %3173 = vperm.xlu0 %4426, %v3170_v36  }
 0x43a   : > { %v3166_v6 = vpop.permute.xlu0 %3165 }
 0x43b   : > { %v3168_v52 = vmul.f32 %v3166_v6, %v3160_v59  ;;  %v3169_v13 = vmul.f32 %v3166_v6, %v3161_v38 }
 0x43e   : > { %v3174_v54 = vpop.permute.xlu0 %3173 }
 0x43f   : > { %v3176_v28 = vadd.f32 %v3174_v54, %v3168_v52  ;;  %v3177_v29 = vadd.f32 %v3174_v54, %v3169_v13 }
 0x441   : > { %vm3178_vm5 = vcmp.gt.f32.partialorder %v3176_v28, 0.0  ;;  %vm3179_vm6 = vcmp.gt.f32.partialorder %v3177_v29, 0.0  ;;  %v3180_v22 = vmul.f32 0.01, %v3176_v28  ;;  %v3181_v58 = vmul.f32 0.01, %v3177_v29 }
 0x443   : > { %v3182_v27 = vsel %vm3178_vm5, %v3176_v28, %v3180_v22  ;;  %v3183_v9 = vsel %vm3179_vm6, %v3177_v29, %v3181_v58 }
 0x444   : > { %3184 = vst [vmem:[%s4630_s27] sm:$0xff] %v3182_v27  ;;  %3185 = vst [vmem:[%s4630_s27 + $0x8] sm:$0xff] %v3183_v9 }
 0x445 PF: > { %s3194_s11 = smul.u32 %s4503_s18, %s4507_s19  ;;  %s3202_s12 = sshll.u32 %s4630_s27, 4  ;;  %s3203_s12 = int_to_ptr.vmem [resolvable:$true] %s3202_s12 }
 0x446   : > { %s3187_s30 = scalar_lea.sflag [#allocation6], %s217_s8  ;;  %s4427_s5 = scalar_lea.vmem %s3203_s12, 256 }
 0x447   : > { %s3601_s13 = sshll.u32 %s3194_s11, 8  ;;  %p4428_p4 = scmp.ne.s32.totalorder %s3203_s12, %s4427_s5 }
 0x448   : > { %s3200_s23 = scalar_lea.hbm %s6198_s4, %s3601_s13  ;;  %s4522_s6 = smov [#allocation5]  }
 0x449   : > { %p4429_p5 = pnand %p4428_p4, %p4601_p6  ;;  %s4431_s9 = sshll.u32 %s4522_s6, 4  ;;  %s4432_s9 = int_to_ptr.vmem [resolvable:$false] %s4431_s9 }
 0x44a   : > { %s4433_s10 = scalar_lea.vmem %s4432_s9, 512  ;;  %p4434_p9 = scmp.lt.s32.totalorder %s3203_s12, %s4432_s9 }
 0x44b   : > { %p4430_p7 = pneg %p4429_p5  ;;  %p4435_p10 = scmp.lt.s32.totalorder %s4433_s10, %s4427_s5 }
 0x44d   : > { %p4436_p11 = por %p4435_p10, %p4434_p9 }
 0x44f   : > { %p4437_p12 = pnand %p4436_p11, %p4430_p7 }
 0x451   : > { %4440 = shalt.err (!%p4437_p12)
}
 0x452   : > { %s4441_s18 = scalar_lea.hbm %s3200_s23, 256  ;;  %s4445_s27 = scalar_lea.hbm %s6198_s4, 512 }
 0x453   : > { %p4442_p13 = scmp.ne.s32.totalorder %s3200_s23, %s4441_s18  ;;  %p4446_p2 = scmp.lt.s32.totalorder %s3200_s23, %s6198_s4 }
 0x454   : > { %p4447_p3 = scmp.lt.s32.totalorder %s4445_s27, %s4441_s18 }
 0x455   : > { %p4443_p0 = pnand %p4442_p13, %p4601_p6 }
 0x456   : > { %p4448_p4 = por %p4447_p3, %p4446_p2 }
 0x457   : > { %p4444_p1 = pneg %p4443_p0 }
 0x459   : > { %p4449_p5 = pnand %p4448_p4, %p4444_p1 }
 0x45b   : > { %4452 = shalt.err (!%p4449_p5)
}
 0x45c   : > { %4352 = dma.vmem_to_hbm [thread:$0]  (%p4601_p6), %s3203_s12, 256, %s3200_s23, %s3187_s30  }
 0x45d PF: > { %p4358_p7 = scmp.ge.s32.totalorder %s4519_s22, 2  ;;  %s3214_s24 = sand.u32 1, %s4491_s15  }
 0x45e   : > { %s3215_s14 = scalar_lea.sflag [#allocation6], %s3214_s24 }
 0x45f   : > { %p4355_p9 = pnand %p4358_p7, %p4608_p8 }
 0x461   : > { %p4356_p10 = pneg %p4355_p9 }
 0x463   : > { %4486 = dma.done.wait (%p4356_p10), %s3215_s14, 256  }
 0x464   : > { %4488 = vsyncadd (%p4356_p10), %s3215_s14, 4294967040  ;;  %s17_s22 = sadd.s32 1, %s4519_s22   ;;  %s6410_s15 = smov %s4495_s16 }
 0x465   : > { %p14_p11 = scmp.ge.s32.totalorder %s17_s22, 6   ;;  %s6411_s16 = smov %s4499_s17 }
 0x466   : > { %s6412_s17 = smov %s4617_s7  ;;  %s6413_s18 = smov %s4511_s20 }
 0x467   : > { %s6414_s19 = smov %s4515_s21  ;;  %s6415_s20 = smov %s6418_s25 }
 0x468   : > { %s6416_s21 = smov %s6422_s26  ;;  %16 = sbr.rel (!%p14_p11) target bundleno = 5 (0x5), region = 94 }
 0x46d   :  { %3220 = vsyncpa [#allocation6], 1 }
 0x46e   :  { %3222 = vsyncpa [#allocation6 + $0x1], 1 }

</bundles_post_ra>
